<compile_context>
chip_gen: v7x
topology: tpu7x:2x2x1
jax: 0.10.0
libtpu: 0.0.40
codegen_flags: <defaults>
</compile_context>

<pallas_src>
import functools

import numpy as np
import jax
import jax.numpy as jnp
from jax import lax
from jax.experimental import pallas as pl
from jax.experimental.pallas import tpu as pltpu


def _round_up(x, m):
    return (x + m - 1) // m * m


# ----------------------------- Pallas kernel --------------------------------


def _convcat_kernel(x_ref, sel_ref, *args, KH, KW):
    """Fused conv_block + 2x nearest upsample for B_blk images (one grid step).

    x_ref:   (B, H, W, Cin)          conv-path input, NHWC (channels lane-minor)
    sel_ref: (HW, 4*HW)              precomputed 0/1 upsample+transpose matrix
    args:    w_0, b_0, ..., w_{L-1}, b_{L-1}, o_ref, pad_ref, patch_ref
      w_l:       (K_pad, Cout)       BN-folded weights, row (kh*KW+kw)*Cmax + c
      b_l:       (1, Cout)           folded conv bias + BN shift
      o_ref:     (B, Cout, 4*HW)     channel-major, lane-dense output
      pad_ref:   VMEM (B, H+2ph, W+2pw, Cmax)   SAME-padding scratch
      patch_ref: VMEM (B*HW, K_pad)             lane-dense im2col scratch
    """
    *layer_refs, o_ref, pad_ref, patch_ref = args
    n_layers = len(layer_refs) // 2
    B, H, W, _ = x_ref.shape
    HW = H * W
    cmax = pad_ref.shape[-1]
    ph, pw = KH // 2, KW // 2

    # Zero both scratches ONCE per grid step (review: not once per layer). The
    # pad halo and the unused patch lanes are never written below; interiors
    # are fully overwritten, and stale-but-finite lanes hit zero weight rows.
    pad_ref[...] = jnp.zeros(pad_ref.shape, pad_ref.dtype)
    patch_ref[...] = jnp.zeros(patch_ref.shape, patch_ref.dtype)

    act = x_ref[...].astype(jnp.float32)                     # (B, H, W, Cin)

    for l in range(n_layers):
        w_ref = layer_refs[2 * l]
        b_ref = layer_refs[2 * l + 1]
        c_in = act.shape[-1]

        # SAME zero padding: interior overwrite only; the halo stays zero.
        for b in range(B):
            pad_ref[b, ph:ph + H, pw:pw + W, 0:c_in] = act[b]

        # Lane-dense im2col: tap t's channels land in lanes [t*cmax, t*cmax+c_in)
        # of the (B*HW, K_pad) patch scratch; then ONE MXU matmul per layer.
        for b in range(B):
            for kh in range(KH):
                for kw in range(KW):
                    t = kh * KW + kw
                    patch_ref[b * HW:(b + 1) * HW,
                              t * cmax:t * cmax + c_in] = (
                        pad_ref[b, kh:kh + H, kw:kw + W, 0:c_in]
                        .reshape(HW, c_in))

        h = jnp.dot(patch_ref[...], w_ref[...],
                    preferred_element_type=jnp.float32)       # (B*HW, Cout)
        h = jnp.maximum(h + b_ref[...], 0.0)                   # folded BN + ReLU
        act = h.reshape(B, H, W, h.shape[-1])

    cout = act.shape[-1]
    # 2x nearest upsample fused with the spatial-major -> channel-major
    # transpose: one transposed-LHS MXU matmul per image against the hoisted
    # 0/1 selection matrix (DMA'd once, stays VMEM-resident).
    # TODO(synk): sel is dense (HW, 4*HW) -> quadratic VMEM/FLOPs in H*W; for
    # large resolutions replace with a separable / tiled upsample.
    sel = sel_ref[...]
    for b in range(B):
        hb = act[b].reshape(HW, cout)                          # (HW, Cout)
        up = lax.dot_general(hb, sel, (((0,), (0,)), ((), ())),
                             preferred_element_type=jnp.float32)  # (Cout, 4HW)
        o_ref[b, :, :] = up.astype(o_ref.dtype)


# ----------------------------- parameter setup ------------------------------


def init_convcat_params(key, channels, size, n_layers):
    """Deterministic synthetic parameters matching nn.Conv2d/BatchNorm2d shapes."""
    cin_total, cout = channels
    kh, kw = size
    params = []
    for i in range(n_layers):
        cin = cin_total if i == 0 else cout
        key, k_w, k_b, k_g, k_be, k_m, k_v = jax.random.split(key, 7)
        w_oihw = jax.random.normal(k_w, (cout, cin, kh, kw), jnp.float32) * 0.1
        b = jax.random.normal(k_b, (cout,), jnp.float32) * 0.1
        gamma = 1.0 + 0.1 * jax.random.normal(k_g, (cout,), jnp.float32)
        beta = 0.1 * jax.random.normal(k_be, (cout,), jnp.float32)
        mean = 0.1 * jax.random.normal(k_m, (cout,), jnp.float32)
        var = jnp.abs(jax.random.normal(k_v, (cout,), jnp.float32)) + 0.5
        params.append(dict(w=w_oihw, b=b, gamma=gamma, beta=beta, mean=mean, var=var))
    return params


def prepare_params(params, eps=1e-5):
    """One-time prep: fold BN into conv weights/bias + re-layout for the
    lane-dense im2col (per-tap channel slot padded to Cmax; zero rows for
    channel slots >= the layer's true Cin).

    Returns [(w_eff (KH, KW, Cmax, Cout), bias (1, Cout)), ...] with
      patches @ w_eff_flat + bias == BN(conv(x) + b).
    Note: cast w_eff/bias to bf16 here for v6e/v7x once the matmuls are large
    enough to matter; kept f32 to hold 1e-4 parity with the f32 reference.
    """
    cmax = max(int(layer["w"].shape[1]) for layer in params)
    prepped = []
    for layer in params:
        w = layer["w"].astype(jnp.float32)                    # (Cout, Cin, KH, KW)
        cout, cin, kh, kw = w.shape
        scale = layer["gamma"] / jnp.sqrt(layer["var"] + eps)
        bias = (layer["b"] - layer["mean"]) * scale + layer["beta"]
        w_eff = jnp.transpose(w * scale[:, None, None, None], (2, 3, 1, 0))
        w_pad = jnp.zeros((kh, kw, cmax, cout), jnp.float32)
        w_pad = w_pad.at[:, :, :cin, :].set(w_eff)
        prepped.append((w_pad, bias.reshape(1, -1).astype(jnp.float32)))
    return prepped


# ----------------------------- ConvCat forward ------------------------------


def _pick_batch_block(n, hw):
    """Images per grid step: batch into the matmul M dim (amortize per-step
    overhead), but keep >= 2 grid steps so both v7x TensorCores get work."""
    best = 1
    for cand in range(1, n + 1):
        if n % cand or cand * hw > 1024 or n // cand < min(2, n):
            continue
        best = cand
    return best


@jax.jit
def convcat_forward(to_conv, to_cat, prepped):
    """ConvCat.forward: cat([Upsample2x(conv_block(to_conv)), to_cat], dim=1).

    to_conv: (N, Cin, H, W); to_cat: (N, Ccat, 2H, 2W). Returns NCHW float32.
    """
    N, Cin, H, W = to_conv.shape
    _, Ccat, H2, W2 = to_cat.shape
    KH, KW, cmax, Cout = prepped[0][0].shape
    assert H2 == 2 * H and W2 == 2 * W, "to_cat must be at 2x resolution"
    # TODO(synk): even kernel sizes (PyTorch padding=k//2 changes output size)
    # and stride != (1, 1) are not implemented; module defaults are odd k, s=1.
    assert KH % 2 == 1 and KW % 2 == 1, "only odd kernel sizes supported"

    HW, HW2 = H * W, H2 * W2
    K_pad = _round_up(KH * KW * cmax, 128)
    b_blk = _pick_batch_block(N, HW)

    # Hoisted 0/1 upsample+transpose selection matrix (trace-time constant):
    #   up[c, q] = sum_p h[p, c] * sel[p, q],  sel[p, q] = (p == src_pixel(q)).
    q = np.arange(HW2)
    src = (q // (2 * W)) // 2 * W + (q % (2 * W)) // 2
    sel = jnp.asarray((np.arange(HW)[:, None] == src[None, :]).astype(np.float32))

    # Only layout op on the activations: NCHW -> NHWC (channels lane-minor).
    x_nhwc = jnp.transpose(to_conv, (0, 2, 3, 1)).astype(jnp.float32)

    flat_params = []
    in_specs = [
        pl.BlockSpec((b_blk, H, W, Cin), lambda n: (n, 0, 0, 0)),
        pl.BlockSpec((HW, HW2), lambda n: (0, 0)),
    ]
    for w4, bias in prepped:
        # (KH, KW, Cmax, Cout) -> (K_pad, Cout): free reshape + tiny zero pad.
        w_flat = w4.reshape(KH * KW * cmax, Cout)
        w_pad = jnp.pad(w_flat, ((0, K_pad - KH * KW * cmax), (0, 0)))
        flat_params.append(w_pad)
        flat_params.append(bias)
        in_specs.append(pl.BlockSpec((K_pad, Cout), lambda n: (0, 0)))
        in_specs.append(pl.BlockSpec((1, Cout), lambda n: (0, 0)))

    up = pl.pallas_call(
        functools.partial(_convcat_kernel, KH=KH, KW=KW),
        out_shape=jax.ShapeDtypeStruct((N, Cout, HW2), jnp.float32),
        grid_spec=pltpu.PrefetchScalarGridSpec(
            num_scalar_prefetch=0,
            grid=(N // b_blk,),
            in_specs=in_specs,
            out_specs=pl.BlockSpec((b_blk, Cout, HW2), lambda n: (n, 0, 0)),
            scratch_shapes=[
                pltpu.VMEM((b_blk, H + 2 * (KH // 2), W + 2 * (KW // 2), cmax),
                           jnp.float32),
                pltpu.VMEM((b_blk * HW, K_pad), jnp.float32),
            ],
        ),
        compiler_params=pltpu.CompilerParams(
            dimension_semantics=("parallel",)),      # batch across v7x's 2 TCs
    )(x_nhwc, sel, *flat_params)

    # Bypass concat in XLA (review: don't route to_cat through the TensorCore
    # store slot just to concatenate).
    up = up.reshape(N, Cout, H2, W2)
    return jnp.concatenate([up, to_cat.astype(up.dtype)], axis=1)


# ----------------------------- reference (plain JAX) -------------------------


def convcat_reference(to_conv_nchw, to_cat_nchw, params, eps=1e-5):
    x = to_conv_nchw
    for layer in params:
        kh, kw = layer["w"].shape[2], layer["w"].shape[3]
        x = lax.conv_general_dilated(
            x, layer["w"], window_strides=(1, 1),
            padding=((kh // 2, kh // 2), (kw // 2, kw // 2)),
            dimension_numbers=("NCHW", "OIHW", "NCHW"),
        ) + layer["b"][None, :, None, None]
        scale = layer["gamma"] / jnp.sqrt(layer["var"] + eps)
        x = (x - layer["mean"][None, :, None, None]) * scale[None, :, None, None]
        x = x + layer["beta"][None, :, None, None]
        x = jnp.maximum(x, 0.0)
    x = jnp.repeat(jnp.repeat(x, 2, axis=2), 2, axis=3)
    return jnp.concatenate([x, to_cat_nchw], axis=1)


# ----------------------------- main ------------------------------------------


if __name__ == "__main__":
    channels = (4, 8)     # (IN, OUT)
    size = (3, 3)
    n_layers = 2

    key = jax.random.PRNGKey(0)
    k_p, k_conv, k_cat = jax.random.split(key, 3)

    params = init_convcat_params(k_p, channels, size, n_layers)
    prepped = prepare_params(params)   # one-time BN fold + weight re-layout

    # to_conv at half spatial resolution; to_cat at the upsampled resolution.
    to_conv = jax.random.normal(k_conv, (2, 4, 8, 8), jnp.float32)
    to_cat = jax.random.normal(k_cat, (2, 4, 16, 16), jnp.float32)

    out = jax.block_until_ready(convcat_forward(to_conv, to_cat, prepped))
    ref = jax.block_until_ready(convcat_reference(to_conv, to_cat, params))

    assert out.shape == (2, channels[1] + to_cat.shape[1], 16, 16), out.shape
    assert jnp.allclose(out, ref, rtol=1e-4, atol=1e-4), float(jnp.abs(out - ref).max())

    print("KERNEL_OK")
</pallas_src>

<mosaic_0001>
module attributes {stable_mosaic.version = 11 : i64} {
  func.func @_convcat_kernel(%arg0: i32, %arg1: memref<1x8x8x4xf32, #tpu.memory_space<vmem>>, %arg2: memref<64x256xf32, #tpu.memory_space<vmem>>, %arg3: memref<128x8xf32, #tpu.memory_space<vmem>>, %arg4: memref<1x8xf32, #tpu.memory_space<vmem>>, %arg5: memref<128x8xf32, #tpu.memory_space<vmem>>, %arg6: memref<1x8xf32, #tpu.memory_space<vmem>>, %arg7: memref<1x8x256xf32, #tpu.memory_space<vmem>>, %arg8: memref<1x10x10x8xf32, #tpu.memory_space<vmem>>, %arg9: memref<64x128xf32, #tpu.memory_space<vmem>>) attributes {dimension_semantics = [#tpu.dimension_semantics<parallel>], iteration_bounds = array<i64: 2>, scalar_prefetch = 0 : i64, scratch_operands = 2 : i64, tpu.core_type = #tpu.core_type<tc>, window_params = [{transform_indices = @transform_0, window_bounds = array<i64: 1, 8, 8, 4>}, {pipeline_mode = #tpu.pipeline_mode<synchronous>, transform_indices = @transform_1, window_bounds = array<i64: 64, 256>}, {pipeline_mode = #tpu.pipeline_mode<synchronous>, transform_indices = @transform_2, window_bounds = array<i64: 128, 8>}, {pipeline_mode = #tpu.pipeline_mode<synchronous>, transform_indices = @transform_3, window_bounds = array<i64: 1, 8>}, {pipeline_mode = #tpu.pipeline_mode<synchronous>, transform_indices = @transform_4, window_bounds = array<i64: 128, 8>}, {pipeline_mode = #tpu.pipeline_mode<synchronous>, transform_indices = @transform_5, window_bounds = array<i64: 1, 8>}, {transform_indices = @transform_6, window_bounds = array<i64: 1, 8, 256>}]} {
    %cst = arith.constant 0.000000e+00 : f32
    %0 = vector.broadcast %cst : f32 to vector<1x10x10x8xf32>
    %c0 = arith.constant 0 : index
    %c0_0 = arith.constant 0 : index
    %c0_1 = arith.constant 0 : index
    %c0_2 = arith.constant 0 : index
    %1 = vector.load %arg8[%c0, %c0_0, %c0_1, %c0_2] : memref<1x10x10x8xf32, #tpu.memory_space<vmem>>, vector<1x10x10x8xf32>
    tpu.vector_store %arg8[%c0, %c0_0, %c0_1, %c0_2], %0 {strides = array<i32>} : memref<1x10x10x8xf32, #tpu.memory_space<vmem>>, vector<1x10x10x8xf32>,
    %cst_3 = arith.constant 0.000000e+00 : f32
    %2 = vector.broadcast %cst_3 : f32 to vector<64x128xf32>
    %c0_4 = arith.constant 0 : index
    %c0_5 = arith.constant 0 : index
    %3 = vector.load %arg9[%c0_4, %c0_5] : memref<64x128xf32, #tpu.memory_space<vmem>>, vector<64x128xf32>
    tpu.vector_store %arg9[%c0_4, %c0_5], %2 {strides = array<i32>} : memref<64x128xf32, #tpu.memory_space<vmem>>, vector<64x128xf32>,
    %c0_6 = arith.constant 0 : index
    %c0_7 = arith.constant 0 : index
    %c0_8 = arith.constant 0 : index
    %c0_9 = arith.constant 0 : index
    %4 = vector.load %arg1[%c0_6, %c0_7, %c0_8, %c0_9] : memref<1x8x8x4xf32, #tpu.memory_space<vmem>>, vector<1x8x8x4xf32>
    %5 = vector.shape_cast %4 : vector<1x8x8x4xf32> to vector<8x8x4xf32>
    %c0_10 = arith.constant 0 : index
    %c1 = arith.constant 1 : index
    %c1_11 = arith.constant 1 : index
    %c0_12 = arith.constant 0 : index
    %6 = vector.load %arg8[%c0_10, %c1, %c1_11, %c0_12] : memref<1x10x10x8xf32, #tpu.memory_space<vmem>>, vector<1x8x8x4xf32>
    %7 = vector.shape_cast %6 : vector<1x8x8x4xf32> to vector<8x8x4xf32>
    %8 = vector.shape_cast %5 : vector<8x8x4xf32> to vector<1x8x8x4xf32>
    tpu.vector_store %arg8[%c0_10, %c1, %c1_11, %c0_12], %8 {strides = array<i32>} : memref<1x10x10x8xf32, #tpu.memory_space<vmem>>, vector<1x8x8x4xf32>,
    %c0_13 = arith.constant 0 : index
    %c0_14 = arith.constant 0 : index
    %c0_15 = arith.constant 0 : index
    %c0_16 = arith.constant 0 : index
    %9 = vector.load %arg8[%c0_13, %c0_14, %c0_15, %c0_16] : memref<1x10x10x8xf32, #tpu.memory_space<vmem>>, vector<1x8x8x4xf32>
    %10 = vector.shape_cast %9 : vector<1x8x8x4xf32> to vector<8x8x4xf32>
    %11 = vector.shape_cast %10 : vector<8x8x4xf32> to vector<64x4xf32>
    %c0_17 = arith.constant 0 : index
    %c0_18 = arith.constant 0 : index
    %12 = vector.load %arg9[%c0_17, %c0_18] : memref<64x128xf32, #tpu.memory_space<vmem>>, vector<64x4xf32>
    tpu.vector_store %arg9[%c0_17, %c0_18], %11 {strides = array<i32>} : memref<64x128xf32, #tpu.memory_space<vmem>>, vector<64x4xf32>,
    %c0_19 = arith.constant 0 : index
    %c0_20 = arith.constant 0 : index
    %c1_21 = arith.constant 1 : index
    %c0_22 = arith.constant 0 : index
    %13 = vector.load %arg8[%c0_19, %c0_20, %c1_21, %c0_22] : memref<1x10x10x8xf32, #tpu.memory_space<vmem>>, vector<1x8x8x4xf32>
    %14 = vector.shape_cast %13 : vector<1x8x8x4xf32> to vector<8x8x4xf32>
    %15 = vector.shape_cast %14 : vector<8x8x4xf32> to vector<64x4xf32>
    %c0_23 = arith.constant 0 : index
    %c8 = arith.constant 8 : index
    %16 = vector.load %arg9[%c0_23, %c8] : memref<64x128xf32, #tpu.memory_space<vmem>>, vector<64x4xf32>
    tpu.vector_store %arg9[%c0_23, %c8], %15 {strides = array<i32>} : memref<64x128xf32, #tpu.memory_space<vmem>>, vector<64x4xf32>,
    %c0_24 = arith.constant 0 : index
    %c0_25 = arith.constant 0 : index
    %c2 = arith.constant 2 : index
    %c0_26 = arith.constant 0 : index
    %17 = vector.load %arg8[%c0_24, %c0_25, %c2, %c0_26] : memref<1x10x10x8xf32, #tpu.memory_space<vmem>>, vector<1x8x8x4xf32>
    %18 = vector.shape_cast %17 : vector<1x8x8x4xf32> to vector<8x8x4xf32>
    %19 = vector.shape_cast %18 : vector<8x8x4xf32> to vector<64x4xf32>
    %c0_27 = arith.constant 0 : index
    %c16 = arith.constant 16 : index
    %20 = vector.load %arg9[%c0_27, %c16] : memref<64x128xf32, #tpu.memory_space<vmem>>, vector<64x4xf32>
    tpu.vector_store %arg9[%c0_27, %c16], %19 {strides = array<i32>} : memref<64x128xf32, #tpu.memory_space<vmem>>, vector<64x4xf32>,
    %c0_28 = arith.constant 0 : index
    %c1_29 = arith.constant 1 : index
    %c0_30 = arith.constant 0 : index
    %c0_31 = arith.constant 0 : index
    %21 = vector.load %arg8[%c0_28, %c1_29, %c0_30, %c0_31] : memref<1x10x10x8xf32, #tpu.memory_space<vmem>>, vector<1x8x8x4xf32>
    %22 = vector.shape_cast %21 : vector<1x8x8x4xf32> to vector<8x8x4xf32>
    %23 = vector.shape_cast %22 : vector<8x8x4xf32> to vector<64x4xf32>
    %c0_32 = arith.constant 0 : index
    %c24 = arith.constant 24 : index
    %24 = vector.load %arg9[%c0_32, %c24] : memref<64x128xf32, #tpu.memory_space<vmem>>, vector<64x4xf32>
    tpu.vector_store %arg9[%c0_32, %c24], %23 {strides = array<i32>} : memref<64x128xf32, #tpu.memory_space<vmem>>, vector<64x4xf32>,
    %c0_33 = arith.constant 0 : index
    %c1_34 = arith.constant 1 : index
    %c1_35 = arith.constant 1 : index
    %c0_36 = arith.constant 0 : index
    %25 = vector.load %arg8[%c0_33, %c1_34, %c1_35, %c0_36] : memref<1x10x10x8xf32, #tpu.memory_space<vmem>>, vector<1x8x8x4xf32>
    %26 = vector.shape_cast %25 : vector<1x8x8x4xf32> to vector<8x8x4xf32>
    %27 = vector.shape_cast %26 : vector<8x8x4xf32> to vector<64x4xf32>
    %c0_37 = arith.constant 0 : index
    %c32 = arith.constant 32 : index
    %28 = vector.load %arg9[%c0_37, %c32] : memref<64x128xf32, #tpu.memory_space<vmem>>, vector<64x4xf32>
    tpu.vector_store %arg9[%c0_37, %c32], %27 {strides = array<i32>} : memref<64x128xf32, #tpu.memory_space<vmem>>, vector<64x4xf32>,
    %c0_38 = arith.constant 0 : index
    %c1_39 = arith.constant 1 : index
    %c2_40 = arith.constant 2 : index
    %c0_41 = arith.constant 0 : index
    %29 = vector.load %arg8[%c0_38, %c1_39, %c2_40, %c0_41] : memref<1x10x10x8xf32, #tpu.memory_space<vmem>>, vector<1x8x8x4xf32>
    %30 = vector.shape_cast %29 : vector<1x8x8x4xf32> to vector<8x8x4xf32>
    %31 = vector.shape_cast %30 : vector<8x8x4xf32> to vector<64x4xf32>
    %c0_42 = arith.constant 0 : index
    %c40 = arith.constant 40 : index
    %32 = vector.load %arg9[%c0_42, %c40] : memref<64x128xf32, #tpu.memory_space<vmem>>, vector<64x4xf32>
    tpu.vector_store %arg9[%c0_42, %c40], %31 {strides = array<i32>} : memref<64x128xf32, #tpu.memory_space<vmem>>, vector<64x4xf32>,
    %c0_43 = arith.constant 0 : index
    %c2_44 = arith.constant 2 : index
    %c0_45 = arith.constant 0 : index
    %c0_46 = arith.constant 0 : index
    %33 = vector.load %arg8[%c0_43, %c2_44, %c0_45, %c0_46] : memref<1x10x10x8xf32, #tpu.memory_space<vmem>>, vector<1x8x8x4xf32>
    %34 = vector.shape_cast %33 : vector<1x8x8x4xf32> to vector<8x8x4xf32>
    %35 = vector.shape_cast %34 : vector<8x8x4xf32> to vector<64x4xf32>
    %c0_47 = arith.constant 0 : index
    %c48 = arith.constant 48 : index
    %36 = vector.load %arg9[%c0_47, %c48] : memref<64x128xf32, #tpu.memory_space<vmem>>, vector<64x4xf32>
    tpu.vector_store %arg9[%c0_47, %c48], %35 {strides = array<i32>} : memref<64x128xf32, #tpu.memory_space<vmem>>, vector<64x4xf32>,
    %c0_48 = arith.constant 0 : index
    %c2_49 = arith.constant 2 : index
    %c1_50 = arith.constant 1 : index
    %c0_51 = arith.constant 0 : index
    %37 = vector.load %arg8[%c0_48, %c2_49, %c1_50, %c0_51] : memref<1x10x10x8xf32, #tpu.memory_space<vmem>>, vector<1x8x8x4xf32>
    %38 = vector.shape_cast %37 : vector<1x8x8x4xf32> to vector<8x8x4xf32>
    %39 = vector.shape_cast %38 : vector<8x8x4xf32> to vector<64x4xf32>
    %c0_52 = arith.constant 0 : index
    %c56 = arith.constant 56 : index
    %40 = vector.load %arg9[%c0_52, %c56] : memref<64x128xf32, #tpu.memory_space<vmem>>, vector<64x4xf32>
    tpu.vector_store %arg9[%c0_52, %c56], %39 {strides = array<i32>} : memref<64x128xf32, #tpu.memory_space<vmem>>, vector<64x4xf32>,
    %c0_53 = arith.constant 0 : index
    %c2_54 = arith.constant 2 : index
    %c2_55 = arith.constant 2 : index
    %c0_56 = arith.constant 0 : index
    %41 = vector.load %arg8[%c0_53, %c2_54, %c2_55, %c0_56] : memref<1x10x10x8xf32, #tpu.memory_space<vmem>>, vector<1x8x8x4xf32>
    %42 = vector.shape_cast %41 : vector<1x8x8x4xf32> to vector<8x8x4xf32>
    %43 = vector.shape_cast %42 : vector<8x8x4xf32> to vector<64x4xf32>
    %c0_57 = arith.constant 0 : index
    %c64 = arith.constant 64 : index
    %44 = vector.load %arg9[%c0_57, %c64] : memref<64x128xf32, #tpu.memory_space<vmem>>, vector<64x4xf32>
    tpu.vector_store %arg9[%c0_57, %c64], %43 {strides = array<i32>} : memref<64x128xf32, #tpu.memory_space<vmem>>, vector<64x4xf32>,
    %c0_58 = arith.constant 0 : index
    %c0_59 = arith.constant 0 : index
    %45 = vector.load %arg9[%c0_58, %c0_59] : memref<64x128xf32, #tpu.memory_space<vmem>>, vector<64x128xf32>
    %c0_60 = arith.constant 0 : index
    %c0_61 = arith.constant 0 : index
    %46 = vector.load %arg3[%c0_60, %c0_61] : memref<128x8xf32, #tpu.memory_space<vmem>>, vector<128x8xf32>
    %cst_62 = arith.constant dense<0.000000e+00> : vector<64x8xf32>
    %47 = tpu.matmul %45, %46, %cst_62 {dimension_numbers = #tpu.dot_dimension_numbers<[1], [0], [0], [1], [0, 0, 1, 1], [], []>} : vector<64x128xf32>, vector<128x8xf32>, vector<64x8xf32> -> vector<64x8xf32>
    %c0_63 = arith.constant 0 : index
    %c0_64 = arith.constant 0 : index
    %48 = vector.load %arg4[%c0_63, %c0_64] : memref<1x8xf32, #tpu.memory_space<vmem>>, vector<1x8xf32>
    %49 = vector.broadcast %48 : vector<1x8xf32> to vector<64x8xf32>
    %50 = arith.addf %47, %49 : vector<64x8xf32>
    %cst_65 = arith.constant 0.000000e+00 : f32
    %51 = vector.broadcast %cst_65 : f32 to vector<64x8xf32>
    %52 = arith.maximumf %50, %51 : vector<64x8xf32>
    %53 = vector.shape_cast %52 : vector<64x8xf32> to vector<1x8x8x8xf32>
    %54 = vector.shape_cast %53 : vector<1x8x8x8xf32> to vector<8x8x8xf32>
    %c0_66 = arith.constant 0 : index
    %c1_67 = arith.constant 1 : index
    %c1_68 = arith.constant 1 : index
    %c0_69 = arith.constant 0 : index
    %55 = vector.load %arg8[%c0_66, %c1_67, %c1_68, %c0_69] : memref<1x10x10x8xf32, #tpu.memory_space<vmem>>, vector<1x8x8x8xf32>
    %56 = vector.shape_cast %55 : vector<1x8x8x8xf32> to vector<8x8x8xf32>
    %57 = vector.shape_cast %54 : vector<8x8x8xf32> to vector<1x8x8x8xf32>
    tpu.vector_store %arg8[%c0_66, %c1_67, %c1_68, %c0_69], %57 {strides = array<i32>} : memref<1x10x10x8xf32, #tpu.memory_space<vmem>>, vector<1x8x8x8xf32>,
    %c0_70 = arith.constant 0 : index
    %c0_71 = arith.constant 0 : index
    %c0_72 = arith.constant 0 : index
    %c0_73 = arith.constant 0 : index
    %58 = vector.load %arg8[%c0_70, %c0_71, %c0_72, %c0_73] : memref<1x10x10x8xf32, #tpu.memory_space<vmem>>, vector<1x8x8x8xf32>
    %59 = vector.shape_cast %58 : vector<1x8x8x8xf32> to vector<8x8x8xf32>
    %60 = vector.shape_cast %59 : vector<8x8x8xf32> to vector<64x8xf32>
    %c0_74 = arith.constant 0 : index
    %c0_75 = arith.constant 0 : index
    %61 = vector.load %arg9[%c0_74, %c0_75] : memref<64x128xf32, #tpu.memory_space<vmem>>, vector<64x8xf32>
    tpu.vector_store %arg9[%c0_74, %c0_75], %60 {strides = array<i32>} : memref<64x128xf32, #tpu.memory_space<vmem>>, vector<64x8xf32>,
    %c0_76 = arith.constant 0 : index
    %c0_77 = arith.constant 0 : index
    %c1_78 = arith.constant 1 : index
    %c0_79 = arith.constant 0 : index
    %62 = vector.load %arg8[%c0_76, %c0_77, %c1_78, %c0_79] : memref<1x10x10x8xf32, #tpu.memory_space<vmem>>, vector<1x8x8x8xf32>
    %63 = vector.shape_cast %62 : vector<1x8x8x8xf32> to vector<8x8x8xf32>
    %64 = vector.shape_cast %63 : vector<8x8x8xf32> to vector<64x8xf32>
    %c0_80 = arith.constant 0 : index
    %c8_81 = arith.constant 8 : index
    %65 = vector.load %arg9[%c0_80, %c8_81] : memref<64x128xf32, #tpu.memory_space<vmem>>, vector<64x8xf32>
    tpu.vector_store %arg9[%c0_80, %c8_81], %64 {strides = array<i32>} : memref<64x128xf32, #tpu.memory_space<vmem>>, vector<64x8xf32>,
    %c0_82 = arith.constant 0 : index
    %c0_83 = arith.constant 0 : index
    %c2_84 = arith.constant 2 : index
    %c0_85 = arith.constant 0 : index
    %66 = vector.load %arg8[%c0_82, %c0_83, %c2_84, %c0_85] : memref<1x10x10x8xf32, #tpu.memory_space<vmem>>, vector<1x8x8x8xf32>
    %67 = vector.shape_cast %66 : vector<1x8x8x8xf32> to vector<8x8x8xf32>
    %68 = vector.shape_cast %67 : vector<8x8x8xf32> to vector<64x8xf32>
    %c0_86 = arith.constant 0 : index
    %c16_87 = arith.constant 16 : index
    %69 = vector.load %arg9[%c0_86, %c16_87] : memref<64x128xf32, #tpu.memory_space<vmem>>, vector<64x8xf32>
    tpu.vector_store %arg9[%c0_86, %c16_87], %68 {strides = array<i32>} : memref<64x128xf32, #tpu.memory_space<vmem>>, vector<64x8xf32>,
    %c0_88 = arith.constant 0 : index
    %c1_89 = arith.constant 1 : index
    %c0_90 = arith.constant 0 : index
    %c0_91 = arith.constant 0 : index
    %70 = vector.load %arg8[%c0_88, %c1_89, %c0_90, %c0_91] : memref<1x10x10x8xf32, #tpu.memory_space<vmem>>, vector<1x8x8x8xf32>
    %71 = vector.shape_cast %70 : vector<1x8x8x8xf32> to vector<8x8x8xf32>
    %72 = vector.shape_cast %71 : vector<8x8x8xf32> to vector<64x8xf32>
    %c0_92 = arith.constant 0 : index
    %c24_93 = arith.constant 24 : index
    %73 = vector.load %arg9[%c0_92, %c24_93] : memref<64x128xf32, #tpu.memory_space<vmem>>, vector<64x8xf32>
    tpu.vector_store %arg9[%c0_92, %c24_93], %72 {strides = array<i32>} : memref<64x128xf32, #tpu.memory_space<vmem>>, vector<64x8xf32>,
    %c0_94 = arith.constant 0 : index
    %c1_95 = arith.constant 1 : index
    %c1_96 = arith.constant 1 : index
    %c0_97 = arith.constant 0 : index
    %74 = vector.load %arg8[%c0_94, %c1_95, %c1_96, %c0_97] : memref<1x10x10x8xf32, #tpu.memory_space<vmem>>, vector<1x8x8x8xf32>
    %75 = vector.shape_cast %74 : vector<1x8x8x8xf32> to vector<8x8x8xf32>
    %76 = vector.shape_cast %75 : vector<8x8x8xf32> to vector<64x8xf32>
    %c0_98 = arith.constant 0 : index
    %c32_99 = arith.constant 32 : index
    %77 = vector.load %arg9[%c0_98, %c32_99] : memref<64x128xf32, #tpu.memory_space<vmem>>, vector<64x8xf32>
    tpu.vector_store %arg9[%c0_98, %c32_99], %76 {strides = array<i32>} : memref<64x128xf32, #tpu.memory_space<vmem>>, vector<64x8xf32>,
    %c0_100 = arith.constant 0 : index
    %c1_101 = arith.constant 1 : index
    %c2_102 = arith.constant 2 : index
    %c0_103 = arith.constant 0 : index
    %78 = vector.load %arg8[%c0_100, %c1_101, %c2_102, %c0_103] : memref<1x10x10x8xf32, #tpu.memory_space<vmem>>, vector<1x8x8x8xf32>
    %79 = vector.shape_cast %78 : vector<1x8x8x8xf32> to vector<8x8x8xf32>
    %80 = vector.shape_cast %79 : vector<8x8x8xf32> to vector<64x8xf32>
    %c0_104 = arith.constant 0 : index
    %c40_105 = arith.constant 40 : index
    %81 = vector.load %arg9[%c0_104, %c40_105] : memref<64x128xf32, #tpu.memory_space<vmem>>, vector<64x8xf32>
    tpu.vector_store %arg9[%c0_104, %c40_105], %80 {strides = array<i32>} : memref<64x128xf32, #tpu.memory_space<vmem>>, vector<64x8xf32>,
    %c0_106 = arith.constant 0 : index
    %c2_107 = arith.constant 2 : index
    %c0_108 = arith.constant 0 : index
    %c0_109 = arith.constant 0 : index
    %82 = vector.load %arg8[%c0_106, %c2_107, %c0_108, %c0_109] : memref<1x10x10x8xf32, #tpu.memory_space<vmem>>, vector<1x8x8x8xf32>
    %83 = vector.shape_cast %82 : vector<1x8x8x8xf32> to vector<8x8x8xf32>
    %84 = vector.shape_cast %83 : vector<8x8x8xf32> to vector<64x8xf32>
    %c0_110 = arith.constant 0 : index
    %c48_111 = arith.constant 48 : index
    %85 = vector.load %arg9[%c0_110, %c48_111] : memref<64x128xf32, #tpu.memory_space<vmem>>, vector<64x8xf32>
    tpu.vector_store %arg9[%c0_110, %c48_111], %84 {strides = array<i32>} : memref<64x128xf32, #tpu.memory_space<vmem>>, vector<64x8xf32>,
    %c0_112 = arith.constant 0 : index
    %c2_113 = arith.constant 2 : index
    %c1_114 = arith.constant 1 : index
    %c0_115 = arith.constant 0 : index
    %86 = vector.load %arg8[%c0_112, %c2_113, %c1_114, %c0_115] : memref<1x10x10x8xf32, #tpu.memory_space<vmem>>, vector<1x8x8x8xf32>
    %87 = vector.shape_cast %86 : vector<1x8x8x8xf32> to vector<8x8x8xf32>
    %88 = vector.shape_cast %87 : vector<8x8x8xf32> to vector<64x8xf32>
    %c0_116 = arith.constant 0 : index
    %c56_117 = arith.constant 56 : index
    %89 = vector.load %arg9[%c0_116, %c56_117] : memref<64x128xf32, #tpu.memory_space<vmem>>, vector<64x8xf32>
    tpu.vector_store %arg9[%c0_116, %c56_117], %88 {strides = array<i32>} : memref<64x128xf32, #tpu.memory_space<vmem>>, vector<64x8xf32>,
    %c0_118 = arith.constant 0 : index
    %c2_119 = arith.constant 2 : index
    %c2_120 = arith.constant 2 : index
    %c0_121 = arith.constant 0 : index
    %90 = vector.load %arg8[%c0_118, %c2_119, %c2_120, %c0_121] : memref<1x10x10x8xf32, #tpu.memory_space<vmem>>, vector<1x8x8x8xf32>
    %91 = vector.shape_cast %90 : vector<1x8x8x8xf32> to vector<8x8x8xf32>
    %92 = vector.shape_cast %91 : vector<8x8x8xf32> to vector<64x8xf32>
    %c0_122 = arith.constant 0 : index
    %c64_123 = arith.constant 64 : index
    %93 = vector.load %arg9[%c0_122, %c64_123] : memref<64x128xf32, #tpu.memory_space<vmem>>, vector<64x8xf32>
    tpu.vector_store %arg9[%c0_122, %c64_123], %92 {strides = array<i32>} : memref<64x128xf32, #tpu.memory_space<vmem>>, vector<64x8xf32>,
    %c0_124 = arith.constant 0 : index
    %c0_125 = arith.constant 0 : index
    %94 = vector.load %arg9[%c0_124, %c0_125] : memref<64x128xf32, #tpu.memory_space<vmem>>, vector<64x128xf32>
    %c0_126 = arith.constant 0 : index
    %c0_127 = arith.constant 0 : index
    %95 = vector.load %arg5[%c0_126, %c0_127] : memref<128x8xf32, #tpu.memory_space<vmem>>, vector<128x8xf32>
    %cst_128 = arith.constant dense<0.000000e+00> : vector<64x8xf32>
    %96 = tpu.matmul %94, %95, %cst_128 {dimension_numbers = #tpu.dot_dimension_numbers<[1], [0], [0], [1], [0, 0, 1, 1], [], []>} : vector<64x128xf32>, vector<128x8xf32>, vector<64x8xf32> -> vector<64x8xf32>
    %c0_129 = arith.constant 0 : index
    %c0_130 = arith.constant 0 : index
    %97 = vector.load %arg6[%c0_129, %c0_130] : memref<1x8xf32, #tpu.memory_space<vmem>>, vector<1x8xf32>
    %98 = vector.broadcast %97 : vector<1x8xf32> to vector<64x8xf32>
    %99 = arith.addf %96, %98 : vector<64x8xf32>
    %cst_131 = arith.constant 0.000000e+00 : f32
    %100 = vector.broadcast %cst_131 : f32 to vector<64x8xf32>
    %101 = arith.maximumf %99, %100 : vector<64x8xf32>
    %102 = vector.shape_cast %101 : vector<64x8xf32> to vector<1x8x8x8xf32>
    %c0_132 = arith.constant 0 : index
    %c0_133 = arith.constant 0 : index
    %103 = vector.load %arg2[%c0_132, %c0_133] : memref<64x256xf32, #tpu.memory_space<vmem>>, vector<64x256xf32>
    %104 = vector.shape_cast %102 : vector<1x8x8x8xf32> to vector<8x8x8xf32>
    %105 = vector.shape_cast %104 : vector<8x8x8xf32> to vector<64x8xf32>
    %cst_134 = arith.constant dense<0.000000e+00> : vector<8x256xf32>
    %106 = tpu.matmul %105, %103, %cst_134 {dimension_numbers = #tpu.dot_dimension_numbers<[0], [0], [1], [1], [0, 1, 1, 1], [], []>} : vector<64x8xf32>, vector<64x256xf32>, vector<8x256xf32> -> vector<8x256xf32>
    %c0_135 = arith.constant 0 : index
    %c0_136 = arith.constant 0 : index
    %c0_137 = arith.constant 0 : index
    %107 = vector.load %arg7[%c0_135, %c0_136, %c0_137] : memref<1x8x256xf32, #tpu.memory_space<vmem>>, vector<1x8x256xf32>
    %108 = vector.shape_cast %107 : vector<1x8x256xf32> to vector<8x256xf32>
    %109 = vector.shape_cast %106 : vector<8x256xf32> to vector<1x8x256xf32>
    tpu.vector_store %arg7[%c0_135, %c0_136, %c0_137], %109 {strides = array<i32>} : memref<1x8x256xf32, #tpu.memory_space<vmem>>, vector<1x8x256xf32>,
    return
  }
  func.func @transform_0(%arg0: i32) -> (i32, i32, i32, i32) {
    %c0_i32 = arith.constant 0 : i32
    %c0_i32_0 = arith.constant 0 : i32
    %c0_i32_1 = arith.constant 0 : i32
    %c0_i32_2 = arith.constant 0 : i32
    return %arg0, %c0_i32, %c0_i32_0, %c0_i32_1 : i32, i32, i32, i32
  }
  func.func @transform_1(%arg0: i32) -> (i32, i32) {
    %c0_i32 = arith.constant 0 : i32
    %c0_i32_0 = arith.constant 0 : i32
    %c0_i32_1 = arith.constant 0 : i32
    return %c0_i32, %c0_i32_0 : i32, i32
  }
  func.func @transform_2(%arg0: i32) -> (i32, i32) {
    %c0_i32 = arith.constant 0 : i32
    %c0_i32_0 = arith.constant 0 : i32
    %c0_i32_1 = arith.constant 0 : i32
    return %c0_i32, %c0_i32_0 : i32, i32
  }
  func.func @transform_3(%arg0: i32) -> (i32, i32) {
    %c0_i32 = arith.constant 0 : i32
    %c0_i32_0 = arith.constant 0 : i32
    %c0_i32_1 = arith.constant 0 : i32
    return %c0_i32, %c0_i32_0 : i32, i32
  }
  func.func @transform_4(%arg0: i32) -> (i32, i32) {
    %c0_i32 = arith.constant 0 : i32
    %c0_i32_0 = arith.constant 0 : i32
    %c0_i32_1 = arith.constant 0 : i32
    return %c0_i32, %c0_i32_0 : i32, i32
  }
  func.func @transform_5(%arg0: i32) -> (i32, i32) {
    %c0_i32 = arith.constant 0 : i32
    %c0_i32_0 = arith.constant 0 : i32
    %c0_i32_1 = arith.constant 0 : i32
    return %c0_i32, %c0_i32_0 : i32, i32
  }
  func.func @transform_6(%arg0: i32) -> (i32, i32, i32) {
    %c0_i32 = arith.constant 0 : i32
    %c0_i32_0 = arith.constant 0 : i32
    %c0_i32_1 = arith.constant 0 : i32
    return %arg0, %c0_i32, %c0_i32_0 : i32, i32, i32
  }
}

</mosaic_0001>

<bundles_post_ra>
// kernel: convcat_forward.1
= control target key start
LH: loop header
LB: loop body
LE: loop exit
PB: predicated region body
PF: predicated region fallthrough
CT: control target
= control target key end

     0   :  { %s1894_s21 = smov 0   ;;  %s2458_s0 = inlined_call_operand.vmem [shape: f32[2,8,8,4], index: 0, kind: input, shape index: {}]   ;;  %s2459_s1 = inlined_call_operand.vmem [shape: f32[64,256], index: 1, kind: input, shape index: {}]   ;;  %s2460_s2 = inlined_call_operand.vmem [shape: f32[128,8], index: 2, kind: input, shape index: {}]   ;;  %s2461_s3 = inlined_call_operand.vmem [shape: f32[1,8], index: 3, kind: input, shape index: {}]   ;;  %s2462_s4 = inlined_call_operand.vmem [shape: f32[128,8], index: 4, kind: input, shape index: {}]   ;;  %s2463_s5 = inlined_call_operand.vmem [shape: f32[1,8], index: 5, kind: input, shape index: {}]   ;;  %s2464_s6 = inlined_call_operand.vmem [shape: f32[2,8,256], index: 6, kind: output, shape index: {}]  }
   0x1 LB: > { %s1593_s22 = sadd.s32 4294967295, %s1848_s21   ;;  %p1597_p0 = scmp.ge.s32.totalorder %s1848_s21, 1  ;;  %s1848_s21 = sphi %s1894_s21, %s16_s21  }
   0x2   : > { %p212_p1 = scmp.lt.s32.totalorder %s1848_s21, 3 }
   0x4   : > { %p213_p2 = pnand %p1597_p0, %p212_p1 }
   0x5   : > { %vm252_vm0 = vcmask (!%p213_p2), 64512   ;;  %vm254_vm1 = vcmask (!%p213_p2), 58368   ;;  %v1850_v0 = vmov (!%p213_p2), 0.0   ;;  %p242_p3 = scmp.lt.s32.totalorder (!%p213_p2), %s1593_s22, 1  ;;  %vm291_vm2 = vcmask (!%p213_p2), 31744   ;;  %s1851_s27 = smov (!%p213_p2), 8  }
   0x6   : > { %216 = sbr.rel (%p213_p2) target bundleno = 1215 (0x4bf), region = 44  ;;  %253 = vst.msk [vmem:[#allocation2] sm:$0xff] (!%p213_p2), %vm252_vm0, %v1850_v0  ;;  %256 = vst.msk [vmem:[#allocation2 + $0x10] sm:$0xff] (!%p213_p2), %vm252_vm0, %v1850_v0  ;;  %s1852_s28 = smov (!%p213_p2), 16   ;;  %v717_v22 = vld [vmem:[%s2460_s2] sm:$0xff] (!%p213_p2)  ;;  %v718_v23 = vld [vmem:[%s2460_s2 + $0x8] sm:$0xff] (!%p213_p2) }
   0x7   : > { %255 = vst.msk [vmem:[#allocation2 + $0x8] sm:$0x3] (!%p213_p2), %vm254_vm1, %v1850_v0  ;;  %257 = vst.msk [vmem:[#allocation2 + $0x18] sm:$0x3] (!%p213_p2), %vm254_vm1, %v1850_v0  ;;  %s1853_s29 = smov (!%p213_p2), 24   ;;  %s1854_s10 = smov (!%p213_p2), 32   ;;  %v1745_v24 = vpack.c.bf16 (!%p213_p2), %v718_v23, %v717_v22 }
   0x8   : > { %258 = vst.msk [vmem:[#allocation2 + $0x20] sm:$0xff] (!%p213_p2), %vm252_vm0, %v1850_v0  ;;  %260 = vst.msk [vmem:[#allocation2 + $0x30] sm:$0xff] (!%p213_p2), %vm252_vm0, %v1850_v0  ;;  %v719_v25 = vld [vmem:[%s2460_s2 + $0x10] sm:$0xff] (!%p213_p2)  ;;  %v720_v26 = vld [vmem:[%s2460_s2 + $0x18] sm:$0xff] (!%p213_p2)  ;;  %s1855_s15 = smov (!%p213_p2), 40   ;;  %s1857_s16 = smov (!%p213_p2), 56  }
   0x9   : > { %259 = vst.msk [vmem:[#allocation2 + $0x28] sm:$0x3] (!%p213_p2), %vm254_vm1, %v1850_v0  ;;  %261 = vst.msk [vmem:[#allocation2 + $0x38] sm:$0x3] (!%p213_p2), %vm254_vm1, %v1850_v0  ;;  %v1749_v27 = vpack.c.bf16 (!%p213_p2), %v720_v26, %v719_v25  ;;  %1746 = vmatprep.subr.bf16.mxu0 (!%p213_p2), %v1745_v24  ;;  %v721_v28 = vld [vmem:[%s2460_s2 + $0x20] sm:$0xff] (!%p213_p2)  ;;  %v722_v29 = vld [vmem:[%s2460_s2 + $0x28] sm:$0xff] (!%p213_p2) }
   0xa   : > { %262 = vst.msk [vmem:[#allocation2 + $0x40] sm:$0xff] (!%p213_p2), %vm252_vm0, %v1850_v0  ;;  %264 = vst.msk [vmem:[#allocation2 + $0x50] sm:$0xff] (!%p213_p2), %vm252_vm0, %v1850_v0  ;;  %1748 = vmatpush3.bf16.msra.mxu0 (!%p213_p2), %v1745_v24  ;;  %v1753_v32 = vpack.c.bf16 (!%p213_p2), %v722_v29, %v721_v28  ;;  %v723_v33 = vld [vmem:[%s2460_s2 + $0x30] sm:$0xff] (!%p213_p2)  ;;  %v724_v34 = vld [vmem:[%s2460_s2 + $0x38] sm:$0xff] (!%p213_p2)  ;;  %s1858_s7 = smov (!%p213_p2), 64   ;;  %vm356_vm3 = vcmask (!%p213_p2), 97344  }
   0xb   : > { %263 = vst.msk [vmem:[#allocation2 + $0x48] sm:$0x3] (!%p213_p2), %vm254_vm1, %v1850_v0  ;;  %265 = vst.msk [vmem:[#allocation2 + $0x58] sm:$0x3] (!%p213_p2), %vm254_vm1, %v1850_v0  ;;  %1750 = vmatprep.subr.bf16.mxu0 (!%p213_p2), %v1749_v27  ;;  %v1757_v35 = vpack.c.bf16 (!%p213_p2), %v724_v34, %v723_v33  ;;  %v725_v36 = vld [vmem:[%s2460_s2 + $0x40] sm:$0xff] (!%p213_p2)  ;;  %v726_v37 = vld [vmem:[%s2460_s2 + $0x48] sm:$0xff] (!%p213_p2) }
   0xc   : > { %266 = vst.msk [vmem:[#allocation2 + $0x60] sm:$0xff] (!%p213_p2), %vm252_vm0, %v1850_v0  ;;  %268 = vst.msk [vmem:[#allocation2 + $0x70] sm:$0xff] (!%p213_p2), %vm252_vm0, %v1850_v0  ;;  %v1761_v39 = vpack.c.bf16 (!%p213_p2), %v726_v37, %v725_v36  ;;  %v727_v40 = vld [vmem:[%s2460_s2 + $0x50] sm:$0xff] (!%p213_p2)  ;;  %v728_v41 = vld [vmem:[%s2460_s2 + $0x58] sm:$0xff] (!%p213_p2)  ;;  %vm405_vm4 = vcmask (!%p213_p2), 162944   ;;  %vm454_vm5 = vcmask (!%p213_p2), 228544  }
   0xd   : > { %267 = vst.msk [vmem:[#allocation2 + $0x68] sm:$0x3] %vm254_vm1, %v1850_v0  ;;  %269 = vst.msk [vmem:[#allocation2 + $0x78] sm:$0x3] %vm254_vm1, %v1850_v0  ;;  %s2466_s22 = smov (!%p242_p3, %s1593_s22), 1  ;;  %v1972_v9 = vld [vmem:[#allocation2] sm:$0xff]  ;;  %v1765_v42 = vpack.c.bf16 %v728_v41, %v727_v40 }
   0xe   : > { %270 = vst.msk [vmem:[#allocation2 + $0x80] sm:$0xff] %vm252_vm0, %v1850_v0  ;;  %272 = vst.msk [vmem:[#allocation2 + $0x90] sm:$0xff] %vm252_vm0, %v1850_v0  ;;  %s1607_s23 = sshll.u32 %s2466_s22, 6  ;;  %v1960_v4 = vld [vmem:[#allocation2 + $0x1] sm:$0xff]  ;;  %1752 = vmatpush3.bf16.msra.mxu0 %v1749_v27  ;;  %v731_v46 = vld [vmem:[%s2460_s2 + $0x70] sm:$0xff]  ;;  %vm503_vm6 = vcmask 294144  }
   0xf   : > { %271 = vst.msk [vmem:[#allocation2 + $0x88] sm:$0x3] %vm254_vm1, %v1850_v0  ;;  %273 = vst.msk [vmem:[#allocation2 + $0x98] sm:$0x3] %vm254_vm1, %v1850_v0  ;;  %s246_s26 = scalar_lea.vmem %s2458_s0, %s1607_s23  ;;  %v1962_v5 = vld [vmem:[#allocation2 + $0x2] sm:$0xff]  ;;  %332 = vrot.lane.b32.xlu0 %v1960_v4, %s1851_s27  ;;  %1754 = vmatprep.subr.bf16.mxu0 %v1753_v32  ;;  %v732_v47 = vld [vmem:[%s2460_s2 + $0x78] sm:$0xff] }
  0x10   : > { %274 = vst [vmem:[#allocation3] sm:$0xff] %v1850_v0  ;;  %275 = vst [vmem:[#allocation3 + $0x8] sm:$0xff] %v1850_v0  ;;  %v282_v1 = vld [vmem:[%s246_s26] sm:$0xff]  ;;  %v283_v2 = vld [vmem:[%s246_s26 + $0x8] sm:$0xff]  ;;  %381 = vrot.lane.b32.xlu1 %v1962_v5, %s1852_s28  ;;  %v1773_v48 = vpack.c.bf16 %v732_v47, %v731_v46  ;;  %vm552_vm7 = vcmask 359744   ;;  %vm602_vm8 = vcmask 425344  }
  0x11   : > { %276 = vst [vmem:[#allocation3 + $0x10] sm:$0xff] %v1850_v0  ;;  %277 = vst [vmem:[#allocation3 + $0x18] sm:$0xff] %v1850_v0  ;;  %v284_v3 = vld [vmem:[%s246_s26 + $0x10] sm:$0xff]  ;;  %v285_v6 = vld [vmem:[%s246_s26 + $0x18] sm:$0xff]  ;;  %vm651_vm9 = vcmask 490944   ;;  %vm700_vm10 = vcmask 556544  }
  0x12   : > { %278 = vst [vmem:[#allocation3 + $0x20] sm:$0xff] %v1850_v0  ;;  %279 = vst [vmem:[#allocation3 + $0x28] sm:$0xff] %v1850_v0  ;;  %v286_v7 = vld [vmem:[%s246_s26 + $0x20] sm:$0xff]  ;;  %v287_v8 = vld [vmem:[%s246_s26 + $0x28] sm:$0xff]  ;;  %1756 = vmatpush3.bf16.msra.mxu0 %v1753_v32  ;;  %vm917_vm11 = vcmask 130112   ;;  %vm966_vm12 = vcmask 195712  }
  0x13   : > { %280 = vst [vmem:[#allocation3 + $0x30] sm:$0xff] %v1850_v0  ;;  %281 = vst [vmem:[#allocation3 + $0x38] sm:$0xff] %v1850_v0  ;;  %v288_v10 = vld [vmem:[%s246_s26 + $0x30] sm:$0xff]  ;;  %v289_v11 = vld [vmem:[%s246_s26 + $0x38] sm:$0xff]  ;;  %s1856_s26 = smov 48   ;;  %1758 = vmatprep.subr.bf16.mxu0 %v1757_v35  ;;  %vm1015_vm13 = vcmask 261312  }
  0x14   : > { %292 = vst.msk [vmem:[#allocation2 + $0x11] sm:$0xff] %vm291_vm2, %v282_v1  ;;  %293 = vst.msk [vmem:[#allocation2 + $0x21] sm:$0xff] %vm291_vm2, %v283_v2  ;;  %v729_v43 = vld [vmem:[%s2460_s2 + $0x60] sm:$0xff]  ;;  %v730_v44 = vld [vmem:[%s2460_s2 + $0x68] sm:$0xff]  ;;  %vm1064_vm14 = vcmask 326912   ;;  %vm1113_vm15 = vcmask 392512  }
  0x15   : > { %294 = vst.msk [vmem:[#allocation2 + $0x31] sm:$0xff] %vm291_vm2, %v284_v3  ;;  %295 = vst.msk [vmem:[#allocation2 + $0x41] sm:$0xff] %vm291_vm2, %v285_v6  ;;  %v1769_v45 = vpack.c.bf16 %v730_v44, %v729_v43  ;;  %v569_v62 = vld [vmem:[#allocation2 + $0x90] sm:$0xff]  ;;  %vm1211_vm1 = vcmask 523712   ;;  %s1608_s23 = sshll.u32 %s2466_s22, 4 }
  0x16   : > { %296 = vst.msk [vmem:[#allocation2 + $0x51] sm:$0xff] %vm291_vm2, %v286_v7  ;;  %297 = vst.msk [vmem:[#allocation2 + $0x61] sm:$0xff] %vm291_vm2, %v287_v8  ;;  %1760 = vmatpush3.bf16.msra.mxu0 %v1757_v35  ;;  %v618_v63 = vld [vmem:[#allocation2 + $0x91] sm:$0xff]  ;;  %s251_s30 = scalar_lea.vmem %s2464_s6, %s1608_s23 }
  0x17   : > { %308 = vst.msk [vmem:[#allocation3] sm:$0xff] %vm291_vm2, %v1972_v9  ;;  %298 = vst.msk [vmem:[#allocation2 + $0x71] sm:$0xff] %vm291_vm2, %v288_v10  ;;  %1762 = vmatprep.subr.bf16.mxu0 %v1761_v39  ;;  %v2119_v3 = vld [vmem:[#allocation2 + $0x92] sm:$0xff] }
  0x18   : > { %299 = vst.msk [vmem:[#allocation2 + $0x81] sm:$0xff] %vm291_vm2, %v289_v11 }
  0x1a   : > { %1764 = vmatpush3.bf16.msra.mxu0 %v1761_v39 }
  0x1b   : > { %v366_v12 = vld [vmem:[#allocation2 + $0x12] sm:$0xff]  ;;  %v415_v14 = vld [vmem:[#allocation2 + $0x20] sm:$0xff]  ;;  %1766 = vmatprep.subr.bf16.mxu0 %v1765_v42 }
  0x1c   : > { %v317_v13 = vld [vmem:[#allocation2 + $0x11] sm:$0xff]  ;;  %383 = vrot.lane.b32.xlu1 %v366_v12, %s1852_s28  ;;  %310 = vst.msk [vmem:[#allocation3 + $0x10] sm:$0xff] %vm291_vm2, %v415_v14  ;;  %v1984_v17 = vld [vmem:[#allocation2 + $0x40] sm:$0xff] }
  0x1d   : > { %334 = vrot.lane.b32.xlu0 %v317_v13, %s1851_s27  ;;  %v414_v15 = vld [vmem:[#allocation2 + $0x10] sm:$0xff]  ;;  %312 = vst.msk [vmem:[#allocation3 + $0x20] sm:$0xff] %vm291_vm2, %v1984_v17  ;;  %v1993_v19 = vld [vmem:[#allocation2 + $0x60] sm:$0xff] }
  0x1e   : > { %v416_v16 = vld [vmem:[#allocation2 + $0x30] sm:$0xff]  ;;  %309 = vst.msk [vmem:[#allocation3 + $0x8] sm:$0xff] %vm291_vm2, %v414_v15  ;;  %v318_v20 = vld [vmem:[#allocation2 + $0x21] sm:$0xff]  ;;  %314 = vst.msk [vmem:[#allocation3 + $0x30] sm:$0xff] %vm291_vm2, %v1993_v19  ;;  %1768 = vmatpush3.bf16.msra.mxu0 %v1765_v42 }
  0x1f   : > { %311 = vst.msk [vmem:[#allocation3 + $0x18] sm:$0xff] %vm291_vm2, %v416_v16  ;;  %v1987_v18 = vld [vmem:[#allocation2 + $0x50] sm:$0xff]  ;;  %v367_v30 = vld [vmem:[#allocation2 + $0x22] sm:$0xff]  ;;  %1770 = vmatprep.subr.bf16.mxu0 %v1769_v45 }
  0x20   : > { %432 = vrot.lane.b32.xlu1 %v415_v14, %s1853_s29  ;;  %313 = vst.msk [vmem:[#allocation3 + $0x28] sm:$0xff] %vm291_vm2, %v1987_v18  ;;  %v1997_v21 = vld [vmem:[#allocation2 + $0x70] sm:$0xff]  ;;  %v466_v49 = vld [vmem:[#allocation2 + $0x41] sm:$0xff] }
  0x21   : > { %430 = vrot.lane.b32.xlu0 %v414_v15, %s1853_s29  ;;  %315 = vst.msk [vmem:[#allocation3 + $0x38] sm:$0xff] %vm291_vm2, %v1997_v21  ;;  %v319_v31 = vld [vmem:[#allocation2 + $0x31] sm:$0xff]  ;;  %v369_v50 = vld [vmem:[#allocation2 + $0x42] sm:$0xff]  ;;  %vm1260_vm2 = vcmask 589312  }
  0x22   : > { %v368_v38 = vld [vmem:[#allocation2 + $0x32] sm:$0xff]  ;;  %1772 = vmatpush3.bf16.msra.mxu0 %v1769_v45  ;;  %v468_v53 = vld [vmem:[#allocation2 + $0x61] sm:$0xff] }
  0x23   : > { %1774 = vmatprep.subr.bf16.mxu0 %v1773_v48  ;;  %v321_v51 = vld [vmem:[#allocation2 + $0x51] sm:$0xff]  ;;  %v517_v55 = vld [vmem:[#allocation2 + $0x62] sm:$0xff] }
  0x24   : > { %336 = vrot.lane.b32.xlu1 %v318_v20, %s1851_s27  ;;  %v370_v52 = vld [vmem:[#allocation2 + $0x52] sm:$0xff]  ;;  %v421_v57 = vld [vmem:[#allocation2 + $0x80] sm:$0xff] }
  0x25   : > { %479 = vrot.lane.b32.xlu0 %v317_v13, %s1854_s10  ;;  %v323_v54 = vld [vmem:[#allocation2 + $0x71] sm:$0xff]  ;;  %v470_v58 = vld [vmem:[#allocation2 + $0x81] sm:$0xff] }
  0x26   : > { %1776 = vmatpush3.bf16.msra.mxu0 %v1773_v48  ;;  %v372_v56 = vld [vmem:[#allocation2 + $0x72] sm:$0xff]  ;;  %v519_v59 = vld [vmem:[#allocation2 + $0x82] sm:$0xff] }
  0x28   : > { %528 = vrot.lane.b32.xlu1 %v366_v12, %s1855_s15 }
  0x29   : > { %481 = vrot.lane.b32.xlu0 %v318_v20, %s1854_s10 }
  0x2c   : > { %385 = vrot.lane.b32.xlu1 %v367_v30, %s1852_s28 }
  0x2d   : > { %338 = vrot.lane.b32.xlu0 %v319_v31, %s1851_s27 }
  0x30   : > { %578 = vrot.lane.b32.xlu1 %v415_v14, %s1856_s26 }
  0x31   : > { %530 = vrot.lane.b32.xlu0 %v367_v30, %s1855_s15 }
  0x34   : > { %434 = vrot.lane.b32.xlu1 %v416_v16, %s1853_s29 }
  0x35   : > { %387 = vrot.lane.b32.xlu0 %v368_v38, %s1852_s28 }
  0x38   : > { %627 = vrot.lane.b32.xlu1 %v318_v20, %s1857_s16 }
  0x39   : > { %580 = vrot.lane.b32.xlu0 %v416_v16, %s1856_s26 }
  0x3c   : > { %483 = vrot.lane.b32.xlu1 %v319_v31, %s1854_s10 }
  0x3d   : > { %436 = vrot.lane.b32.xlu0 %v1984_v17, %s1853_s29 }
  0x40   : > { %676 = vrot.lane.b32.xlu1 %v367_v30, %s1858_s7 }
  0x41   : > { %629 = vrot.lane.b32.xlu0 %v319_v31, %s1857_s16 }
  0x44   : > { %485 = vrot.lane.b32.xlu1 %v466_v49, %s1854_s10 }
  0x45   : > { %340 = vrot.lane.b32.xlu0 %v466_v49, %s1851_s27 }
  0x48   : > { %678 = vrot.lane.b32.xlu1 %v368_v38, %s1858_s7 }
  0x49   : > { %532 = vrot.lane.b32.xlu0 %v368_v38, %s1855_s15 }
  0x4c   : > { %389 = vrot.lane.b32.xlu1 %v369_v50, %s1852_s28 }
  0x4d   : > { %342 = vrot.lane.b32.xlu0 %v321_v51, %s1851_s27 }
  0x50   : > { %582 = vrot.lane.b32.xlu1 %v1984_v17, %s1856_s26 }
  0x51   : > { %534 = vrot.lane.b32.xlu0 %v369_v50, %s1855_s15 }
  0x54   : > { %438 = vrot.lane.b32.xlu1 %v1987_v18, %s1853_s29 }
  0x55   : > { %391 = vrot.lane.b32.xlu0 %v370_v52, %s1852_s28 }
  0x58   : > { %631 = vrot.lane.b32.xlu1 %v466_v49, %s1857_s16 }
  0x59   : > { %584 = vrot.lane.b32.xlu0 %v1987_v18, %s1856_s26 }
  0x5c   : > { %487 = vrot.lane.b32.xlu1 %v321_v51, %s1854_s10 }
  0x5d   : > { %440 = vrot.lane.b32.xlu0 %v1993_v19, %s1853_s29 }
  0x60   : > { %680 = vrot.lane.b32.xlu1 %v369_v50, %s1858_s7 }
  0x61   : > { %633 = vrot.lane.b32.xlu0 %v321_v51, %s1857_s16 }
  0x64   : > { %489 = vrot.lane.b32.xlu1 %v468_v53, %s1854_s10 }
  0x65   : > { %344 = vrot.lane.b32.xlu0 %v468_v53, %s1851_s27 }
  0x68   : > { %682 = vrot.lane.b32.xlu1 %v370_v52, %s1858_s7 }
  0x69   : > { %536 = vrot.lane.b32.xlu0 %v370_v52, %s1855_s15 }
  0x6c   : > { %393 = vrot.lane.b32.xlu1 %v517_v55, %s1852_s28 }
  0x6d   : > { %346 = vrot.lane.b32.xlu0 %v323_v54, %s1851_s27 }
  0x70   : > { %586 = vrot.lane.b32.xlu1 %v1993_v19, %s1856_s26 }
  0x71   : > { %538 = vrot.lane.b32.xlu0 %v517_v55, %s1855_s15 }
  0x74   : > { %442 = vrot.lane.b32.xlu1 %v1997_v21, %s1853_s29 }
  0x75   : > { %395 = vrot.lane.b32.xlu0 %v372_v56, %s1852_s28 }
  0x78   : > { %635 = vrot.lane.b32.xlu1 %v468_v53, %s1857_s16 }
  0x79   : > { %588 = vrot.lane.b32.xlu0 %v1997_v21, %s1856_s26 }
  0x7c   : > { %491 = vrot.lane.b32.xlu1 %v323_v54, %s1854_s10 }
  0x7d   : > { %444 = vrot.lane.b32.xlu0 %v421_v57, %s1853_s29 }
  0x80   : > { %684 = vrot.lane.b32.xlu1 %v517_v55, %s1858_s7 }
  0x81   : > { %637 = vrot.lane.b32.xlu0 %v323_v54, %s1857_s16  ;;  %v333_v60 = vpop.permute.xlu0 %332 }
  0x82   : > { %v382_v61 = vpop.permute.xlu1 %381  ;;  %357 = vst.msk [vmem:[#allocation3] sm:$0xff] %vm356_vm3, %v333_v60 }
  0x83   : > { %406 = vst.msk [vmem:[#allocation3] sm:$0xff] %vm405_vm4, %v382_v61 }
  0x84   : > { %540 = vrot.lane.b32.xlu1 %v372_v56, %s1855_s15 }
  0x85   : > { %493 = vrot.lane.b32.xlu0 %v470_v58, %s1854_s10 }
  0x88   : > { %542 = vrot.lane.b32.xlu1 %v519_v59, %s1855_s15 }
  0x89   : > { %686 = vrot.lane.b32.xlu0 %v372_v56, %s1858_s7 }
  0x8c   : > { %592 = vrot.lane.b32.xlu1 %v569_v62, %s1856_s26 }
  0x8d   : > { %590 = vrot.lane.b32.xlu0 %v421_v57, %s1856_s26 }
  0x8e   : > { %v384_v1 = vpop.permute.xlu1 %383 }
  0x8f   : > { %v335_v2 = vpop.permute.xlu0 %334 }
  0x90   : > { %358 = vst.msk [vmem:[#allocation3 + $0x8] sm:$0xff] %vm356_vm3, %v335_v2  ;;  %641 = vrot.lane.b32.xlu1 %v618_v63, %s1857_s16 }
  0x91   : > { %407 = vst.msk [vmem:[#allocation3 + $0x8] sm:$0xff] %vm405_vm4, %v384_v1  ;;  %639 = vrot.lane.b32.xlu0 %v470_v58, %s1857_s16 }
  0x92   : > { %v433_v6 = vpop.permute.xlu1 %432 }
  0x93   : > { %v431_v7 = vpop.permute.xlu0 %430  ;;  %456 = vst.msk [vmem:[#allocation3 + $0x8] sm:$0xff] %vm454_vm5, %v433_v6 }
  0x94   : > { %455 = vst.msk [vmem:[#allocation3] sm:$0xff] %vm454_vm5, %v431_v7  ;;  %690 = vrot.lane.b32.xlu1 %v2119_v3, %s1858_s7 }
  0x95   : > { %688 = vrot.lane.b32.xlu0 %v519_v59, %s1858_s7 }
  0x96   : > { %v337_v8 = vpop.permute.xlu1 %336 }
  0x97   : > { %v480_v10 = vpop.permute.xlu0 %479  ;;  %359 = vst.msk [vmem:[#allocation3 + $0x10] sm:$0xff] %vm356_vm3, %v337_v8 }
  0x98   : > { %504 = vst.msk [vmem:[#allocation3] sm:$0xff] %vm503_vm6, %v480_v10  ;;  %1152 = vrot.lane.b32.xlu1 %v569_v62, %s1856_s26 }
  0x99   : > { %893 = vrot.lane.b32.xlu0 %v1960_v4, %s1851_s27 }
  0x9a   : > { %v529_v11 = vpop.permute.xlu1 %528 }
  0x9b   : > { %v482_v12 = vpop.permute.xlu0 %481  ;;  %553 = vst.msk [vmem:[#allocation3] sm:$0xff] %vm552_vm7, %v529_v11 }
  0x9c   : > { %505 = vst.msk [vmem:[#allocation3 + $0x8] sm:$0xff] %vm503_vm6, %v482_v12  ;;  %1201 = vrot.lane.b32.xlu1 %v618_v63, %s1857_s16 }
  0x9d   : > { %942 = vrot.lane.b32.xlu0 %v1962_v5, %s1852_s28 }
  0x9e   : > { %v386_v13 = vpop.permute.xlu1 %385 }
  0x9f   : > { %v339_v14 = vpop.permute.xlu0 %338  ;;  %408 = vst.msk [vmem:[#allocation3 + $0x10] sm:$0xff] %vm405_vm4, %v386_v13 }
  0xa0   : > { %360 = vst.msk [vmem:[#allocation3 + $0x18] sm:$0xff] %vm356_vm3, %v339_v14 }
  0xa2   : > { %v579_v15 = vpop.permute.xlu1 %578 }
  0xa3   : > { %v531_v4 = vpop.permute.xlu0 %530  ;;  %603 = vst.msk [vmem:[#allocation3] sm:$0xff] %vm602_vm8, %v579_v15  ;;  %v2198_v15 = vld [vmem:[%s2461_s3] ss:$0 sm:$0xff] }
  0xa4   : > { %554 = vst.msk [vmem:[#allocation3 + $0x8] sm:$0xff] %vm552_vm7, %v531_v4 }
  0xa6   : > { %v435_v16 = vpop.permute.xlu1 %434 }
  0xa7   : > { %v388_v17 = vpop.permute.xlu0 %387  ;;  %457 = vst.msk [vmem:[#allocation3 + $0x10] sm:$0xff] %vm454_vm5, %v435_v16 }
  0xa8   : > { %409 = vst.msk [vmem:[#allocation3 + $0x18] sm:$0xff] %vm405_vm4, %v388_v17 }
  0xaa   : > { %v628_v5 = vpop.permute.xlu1 %627 }
  0xab   : > { %v581_v18 = vpop.permute.xlu0 %580  ;;  %652 = vst.msk [vmem:[#allocation3] sm:$0xff] %vm651_vm9, %v628_v5 }
  0xac   : > { %604 = vst.msk [vmem:[#allocation3 + $0x8] sm:$0xff] %vm602_vm8, %v581_v18 }
  0xae   : > { %v484_v19 = vpop.permute.xlu1 %483 }
  0xaf   : > { %v437_v20 = vpop.permute.xlu0 %436  ;;  %506 = vst.msk [vmem:[#allocation3 + $0x10] sm:$0xff] %vm503_vm6, %v484_v19 }
  0xb0   : > { %458 = vst.msk [vmem:[#allocation3 + $0x18] sm:$0xff] %vm454_vm5, %v437_v20 }
  0xb2   : > { %v677_v21 = vpop.permute.xlu1 %676 }
  0xb3   : > { %v630_v22 = vpop.permute.xlu0 %629  ;;  %701 = vst.msk [vmem:[#allocation3] sm:$0xff] %vm700_vm10, %v677_v21 }
  0xb4   : > { %653 = vst.msk [vmem:[#allocation3 + $0x8] sm:$0xff] %vm651_vm9, %v630_v22 }
  0xb6   : > { %v486_v23 = vpop.permute.xlu1 %485 }
  0xb7   : > { %v341_v24 = vpop.permute.xlu0 %340  ;;  %507 = vst.msk [vmem:[#allocation3 + $0x18] sm:$0xff] %vm503_vm6, %v486_v23 }
  0xb8   : > { %361 = vst.msk [vmem:[#allocation3 + $0x20] sm:$0xff] %vm356_vm3, %v341_v24 }
  0xba   : > { %v679_v25 = vpop.permute.xlu1 %678  ;;  %v709_v27 = vld [vmem:[#allocation3] sm:$0xff] }
  0xbb   : > { %v533_v26 = vpop.permute.xlu0 %532  ;;  %702 = vst.msk [vmem:[#allocation3 + $0x8] sm:$0xff] %vm700_vm10, %v679_v25  ;;  %1689 = vmatprep.mubr.f32.mxu0 %v709_v27 }
  0xbc   : > { %555 = vst.msk [vmem:[#allocation3 + $0x10] sm:$0xff] %vm552_vm7, %v533_v26 }
  0xbd   : > { %869 = vst.msk [vmem:[#allocation3] sm:$0xff] %vm252_vm0, %v1972_v9 }
  0xbe   : > { %v390_v28 = vpop.permute.xlu1 %389 }
  0xbf   : > { %v343_v29 = vpop.permute.xlu0 %342  ;;  %410 = vst.msk [vmem:[#allocation3 + $0x20] sm:$0xff] %vm405_vm4, %v390_v28 }
  0xc0   : > { %362 = vst.msk [vmem:[#allocation3 + $0x28] sm:$0xff] %vm356_vm3, %v343_v29 }
  0xc2   : > { %v583_v30 = vpop.permute.xlu1 %582  ;;  %v710_v32 = vld [vmem:[#allocation3 + $0x8] sm:$0xff] }
  0xc3   : > { %v535_v31 = vpop.permute.xlu0 %534  ;;  %605 = vst.msk [vmem:[#allocation3 + $0x10] sm:$0xff] %vm602_vm8, %v583_v30  ;;  %1690 = vmatmul.mubr.f32.vlgmr.msra.gmra.mrb[0].mxu0 %v710_v32  ;;  %v1277_v30 = vld [vmem:[%s2462_s4] sm:$0xff] }
  0xc4   : > { %556 = vst.msk [vmem:[#allocation3 + $0x18] sm:$0xff] %vm552_vm7, %v535_v31  ;;  %v1278_v31 = vld [vmem:[%s2462_s4 + $0x8] sm:$0xff] }
  0xc5   : > { %v1777_v32 = vpack.c.bf16 %v1278_v31, %v1277_v30 }
  0xc6   : > { %v439_v33 = vpop.permute.xlu1 %438 }
  0xc7   : > { %v392_v34 = vpop.permute.xlu0 %391  ;;  %459 = vst.msk [vmem:[#allocation3 + $0x20] sm:$0xff] %vm454_vm5, %v439_v33  ;;  %1778 = vmatprep.subr.bf16.mxu1 %v1777_v32 }
  0xc8   : > { %411 = vst.msk [vmem:[#allocation3 + $0x28] sm:$0xff] %vm405_vm4, %v392_v34  ;;  %1780 = vmatpush3.bf16.msra.mxu1 %v1777_v32  ;;  %v1279_v34 = vld [vmem:[%s2462_s4 + $0x10] sm:$0xff] }
  0xca   : > { %v632_v9 = vpop.permute.xlu1 %631 }
  0xcb   : > { %v585_v35 = vpop.permute.xlu0 %584  ;;  %654 = vst.msk [vmem:[#allocation3 + $0x10] sm:$0xff] %vm651_vm9, %v632_v9  ;;  %v1280_v9 = vld [vmem:[%s2462_s4 + $0x18] sm:$0xff] }
  0xcc   : > { %606 = vst.msk [vmem:[#allocation3 + $0x18] sm:$0xff] %vm602_vm8, %v585_v35  ;;  %v1781_v35 = vpack.c.bf16 %v1280_v9, %v1279_v34 }
  0xce   : > { %v488_v36 = vpop.permute.xlu1 %487  ;;  %1782 = vmatprep.subr.bf16.mxu1 %v1781_v35 }
  0xcf   : > { %v441_v37 = vpop.permute.xlu0 %440  ;;  %508 = vst.msk [vmem:[#allocation3 + $0x20] sm:$0xff] %vm503_vm6, %v488_v36  ;;  %1784 = vmatpush3.bf16.msra.mxu1 %v1781_v35 }
  0xd0   : > { %460 = vst.msk [vmem:[#allocation3 + $0x28] sm:$0xff] %vm454_vm5, %v441_v37 }
  0xd2   : > { %v681_v38 = vpop.permute.xlu1 %680 }
  0xd3   : > { %v634_v39 = vpop.permute.xlu0 %633  ;;  %703 = vst.msk [vmem:[#allocation3 + $0x10] sm:$0xff] %vm700_vm10, %v681_v38  ;;  %v1281_v38 = vld [vmem:[%s2462_s4 + $0x20] sm:$0xff] }
  0xd4   : > { %655 = vst.msk [vmem:[#allocation3 + $0x18] sm:$0xff] %vm651_vm9, %v634_v39  ;;  %v1282_v39 = vld [vmem:[%s2462_s4 + $0x28] sm:$0xff] }
  0xd6   : > { %v490_v40 = vpop.permute.xlu1 %489 }
  0xd7   : > { %v345_v41 = vpop.permute.xlu0 %344  ;;  %509 = vst.msk [vmem:[#allocation3 + $0x28] sm:$0xff] %vm503_vm6, %v490_v40  ;;  %v1785_v40 = vpack.c.bf16 %v1282_v39, %v1281_v38 }
  0xd8   : > { %363 = vst.msk [vmem:[#allocation3 + $0x30] sm:$0xff] %vm356_vm3, %v345_v41 }
  0xd9   : > { %1786 = vmatprep.subr.bf16.mxu1 %v1785_v40 }
  0xda   : > { %v683_v42 = vpop.permute.xlu1 %682  ;;  %v711_v44 = vld [vmem:[#allocation3 + $0x10] sm:$0xff]  ;;  %1788 = vmatpush3.bf16.msra.mxu1 %v1785_v40 }
  0xdb   : > { %v537_v43 = vpop.permute.xlu0 %536  ;;  %704 = vst.msk [vmem:[#allocation3 + $0x18] sm:$0xff] %vm700_vm10, %v683_v42  ;;  %1692 = vmatprep.mubr.f32.mxu0 %v711_v44  ;;  %v1283_v42 = vld [vmem:[%s2462_s4 + $0x30] sm:$0xff] }
  0xdc   : > { %557 = vst.msk [vmem:[#allocation3 + $0x20] sm:$0xff] %vm552_vm7, %v537_v43  ;;  %v1284_v43 = vld [vmem:[%s2462_s4 + $0x38] sm:$0xff] }
  0xdd   : > { %v1789_v44 = vpack.c.bf16 %v1284_v43, %v1283_v42 }
  0xde   : > { %v394_v46 = vpop.permute.xlu1 %393 }
  0xdf   : > { %v347_v45 = vpop.permute.xlu0 %346  ;;  %412 = vst.msk [vmem:[#allocation3 + $0x30] sm:$0xff] %vm405_vm4, %v394_v46  ;;  %1790 = vmatprep.subr.bf16.mxu1 %v1789_v44  ;;  %v1285_v46 = vld [vmem:[%s2462_s4 + $0x40] sm:$0xff] }
  0xe0   : > { %364 = vst.msk [vmem:[#allocation3 + $0x38] sm:$0xff] %vm356_vm3, %v347_v45  ;;  %1792 = vmatpush3.bf16.msra.mxu1 %v1789_v44  ;;  %vm1461_vm3 = vcmask 523264  }
  0xe2   : > { %v712_v48 = vld [vmem:[#allocation3 + $0x18] sm:$0xff]  ;;  %v587_v49 = vpop.permute.xlu1 %586 }
  0xe3   : > { %v539_v47 = vpop.permute.xlu0 %538  ;;  %1693 = vmatmul.mubr.f32.gmra.mrb[2].mxu0 %v712_v48  ;;  %607 = vst.msk [vmem:[#allocation3 + $0x20] sm:$0xff] %vm602_vm8, %v587_v49 }
  0xe4   : > { %558 = vst.msk [vmem:[#allocation3 + $0x28] sm:$0xff] %vm552_vm7, %v539_v47  ;;  %v1286_v47 = vld [vmem:[%s2462_s4 + $0x48] sm:$0xff] }
  0xe5   : > { %v1793_v48 = vpack.c.bf16 %v1286_v47, %v1285_v46 }
  0xe6   : > { %v443_v51 = vpop.permute.xlu1 %442 }
  0xe7   : > { %v396_v50 = vpop.permute.xlu0 %395  ;;  %461 = vst.msk [vmem:[#allocation3 + $0x30] sm:$0xff] %vm454_vm5, %v443_v51  ;;  %1794 = vmatprep.subr.bf16.mxu1 %v1793_v48  ;;  %v1288_v51 = vld [vmem:[%s2462_s4 + $0x58] sm:$0xff] }
  0xe8   : > { %413 = vst.msk [vmem:[#allocation3 + $0x38] sm:$0xff] %vm405_vm4, %v396_v50  ;;  %v1287_v50 = vld [vmem:[%s2462_s4 + $0x50] sm:$0xff]  ;;  %1796 = vmatpush3.bf16.msra.mxu1 %v1793_v48 }
  0xea   : > { %v636_v53 = vpop.permute.xlu1 %635 }
  0xeb   : > { %v589_v52 = vpop.permute.xlu0 %588  ;;  %656 = vst.msk [vmem:[#allocation3 + $0x20] sm:$0xff] %vm651_vm9, %v636_v53 }
  0xec   : > { %608 = vst.msk [vmem:[#allocation3 + $0x28] sm:$0xff] %vm602_vm8, %v589_v52  ;;  %v1797_v52 = vpack.c.bf16 %v1288_v51, %v1287_v50 }
  0xee   : > { %v492_v55 = vpop.permute.xlu1 %491  ;;  %1798 = vmatprep.subr.bf16.mxu1 %v1797_v52 }
  0xef   : > { %v445_v54 = vpop.permute.xlu0 %444  ;;  %510 = vst.msk [vmem:[#allocation3 + $0x30] sm:$0xff] %vm503_vm6, %v492_v55  ;;  %v1290_v55 = vld [vmem:[%s2462_s4 + $0x68] sm:$0xff]  ;;  %1800 = vmatpush3.bf16.msra.mxu1 %v1797_v52 }
  0xf0   : > { %462 = vst.msk [vmem:[#allocation3 + $0x38] sm:$0xff] %vm454_vm5, %v445_v54  ;;  %v1289_v54 = vld [vmem:[%s2462_s4 + $0x60] sm:$0xff] }
  0xf2   : > { %v685_v57 = vpop.permute.xlu1 %684 }
  0xf3   : > { %v638_v56 = vpop.permute.xlu0 %637  ;;  %705 = vst.msk [vmem:[#allocation3 + $0x20] sm:$0xff] %vm700_vm10, %v685_v57 }
  0xf4   : > { %657 = vst.msk [vmem:[#allocation3 + $0x28] sm:$0xff] %vm651_vm9, %v638_v56  ;;  %v1801_v56 = vpack.c.bf16 %v1290_v55, %v1289_v54 }
  0xf6   : > { %v541_v59 = vpop.permute.xlu1 %540  ;;  %1802 = vmatprep.subr.bf16.mxu1 %v1801_v56 }
  0xf7   : > { %v494_v58 = vpop.permute.xlu0 %493  ;;  %559 = vst.msk [vmem:[#allocation3 + $0x30] sm:$0xff] %vm552_vm7, %v541_v59  ;;  %1804 = vmatpush3.bf16.msra.mxu1 %v1801_v56 }
  0xf8   : > { %511 = vst.msk [vmem:[#allocation3 + $0x38] sm:$0xff] %vm503_vm6, %v494_v58 }
  0xfa   : > { %v713_v61 = vld [vmem:[#allocation3 + $0x20] sm:$0xff]  ;;  %v543_v62 = vpop.permute.xlu1 %542 }
  0xfb   : > { %v687_v60 = vpop.permute.xlu0 %686  ;;  %1695 = vmatprep.mubr.f32.mxu0 %v713_v61  ;;  %560 = vst.msk [vmem:[#allocation3 + $0x38] sm:$0xff] %vm552_vm7, %v543_v62  ;;  %v1292_v61 = vld [vmem:[%s2462_s4 + $0x78] sm:$0xff] }
  0xfc   : > { %706 = vst.msk [vmem:[#allocation3 + $0x28] sm:$0xff] %vm700_vm10, %v687_v60  ;;  %v1291_v60 = vld [vmem:[%s2462_s4 + $0x70] sm:$0xff] }
  0xfe   : > { %v593_v1 = vpop.permute.xlu1 %592 }
  0xff   : > { %v591_v63 = vpop.permute.xlu0 %590  ;;  %610 = vst.msk [vmem:[#allocation3 + $0x38] sm:$0xff] %vm602_vm8, %v593_v1 }
 0x100   : > { %609 = vst.msk [vmem:[#allocation3 + $0x30] sm:$0xff] %vm602_vm8, %v591_v63  ;;  %v1805_v63 = vpack.c.bf16 %v1292_v61, %v1291_v60 }
 0x102   : > { %v642_v7 = vpop.permute.xlu1 %641  ;;  %1806 = vmatprep.subr.bf16.mxu1 %v1805_v63 }
 0x103   : > { %v714_v2 = vld [vmem:[#allocation3 + $0x28] sm:$0xff]  ;;  %v640_v6 = vpop.permute.xlu0 %639  ;;  %659 = vst.msk [vmem:[#allocation3 + $0x38] sm:$0xff] %vm651_vm9, %v642_v7  ;;  %1808 = vmatpush3.bf16.msra.mxu1 %v1805_v63 }
 0x104   : > { %1696 = vmatmul.mubr.f32.gmra.mrb[4].mxu0 %v714_v2  ;;  %658 = vst.msk [vmem:[#allocation3 + $0x30] sm:$0xff] %vm651_vm9, %v640_v6 }
 0x106   : > { %v691_v10 = vpop.permute.xlu1 %690 }
 0x107   : > { %v689_v8 = vpop.permute.xlu0 %688  ;;  %708 = vst.msk [vmem:[#allocation3 + $0x38] sm:$0xff] %vm700_vm10, %v691_v10 }
 0x108   : > { %707 = vst.msk [vmem:[#allocation3 + $0x30] sm:$0xff] %vm700_vm10, %v689_v8 }
 0x10b   : > { %v894_v13 = vpop.permute.xlu0 %893 }
 0x10c   : > { %918 = vst.msk [vmem:[#allocation3] sm:$0xff] %vm917_vm11, %v894_v13 }
 0x10e   : > { %v716_v12 = vld [vmem:[#allocation3 + $0x38] sm:$0xff] }
 0x10f   : > { %v715_v11 = vld [vmem:[#allocation3 + $0x30] sm:$0xff]  ;;  %v943_v14 = vpop.permute.xlu0 %942 }
 0x110   : > { %1698 = vmatprep.mubr.f32.mxu0 %v715_v11  ;;  %967 = vst.msk [vmem:[#allocation3] sm:$0xff] %vm966_vm12, %v943_v14 }
 0x111   : > { %1699 = vmatmul.mubr.f32.gmra.mrb[6].mxu0 %v716_v12 }
 0x112   : > { %1529 = vmatprep.mubr.f32.mxu0 %v1850_v0 }
 0x196   : > { %v1691_v4 = vpop.f32.mrb[0].mxu0 }
 0x197   : > { %v812_v16 = vadd.f32 %v1691_v4, %v2198_v15  ;;  %v806_v17 = vpop.f32.mrb[1].mxu0 }
 0x198   : > { %v807_v5 = vadd.f32 %v2198_v15, %v806_v17 }
 0x199   : > { %v846_v0 = vmax.f32 %v812_v16, 0.0 }
 0x19a   : > { %v845_v18 = vmax.f32 %v807_v5, 0.0 }
 0x19b   : > { %854 = vst.msk [vmem:[#allocation2 + $0x21] sm:$0xff] %vm252_vm0, %v846_v0 }
 0x19c   : > { %853 = vst.msk [vmem:[#allocation2 + $0x11] sm:$0xff] %vm252_vm0, %v845_v18 }
 0x1a2   : > { %v1025_v19 = vld [vmem:[#allocation2 + $0x21] sm:$0xff] }
 0x1a3   : > { %v976_v20 = vld [vmem:[#allocation2 + $0x20] sm:$0xff]  ;;  %1042 = vrot.lane.b32.xlu0 %v1025_v19, %s1854_s10  ;;  %v975_v21 = vld [vmem:[#allocation2 + $0x10] sm:$0xff] }
 0x1a4   : > { %993 = vrot.lane.b32.xlu1 %v976_v20, %s1853_s29  ;;  %871 = vst.msk [vmem:[#allocation3 + $0x10] sm:$0xff] %vm252_vm0, %v976_v20  ;;  %870 = vst.msk [vmem:[#allocation3 + $0x8] sm:$0xff] %vm252_vm0, %v975_v21  ;;  %v1074_v22 = vld [vmem:[#allocation2 + $0x22] sm:$0xff]  ;;  %v1024_v23 = vld [vmem:[#allocation2 + $0x11] sm:$0xff] }
 0x1a5   : > { %v927_v33 = vld [vmem:[#allocation2 + $0x12] sm:$0xff] }
 0x1a7   : > { %1091 = vrot.lane.b32.xlu0 %v1074_v22, %s1855_s15 }
 0x1a8   : > { %897 = vrot.lane.b32.xlu1 %v1025_v19, %s1851_s27 }
 0x1ab   : > { %991 = vrot.lane.b32.xlu0 %v975_v21, %s1853_s29 }
 0x1ac   : > { %946 = vrot.lane.b32.xlu1 %v1074_v22, %s1852_s28 }
 0x1af   : > { %1040 = vrot.lane.b32.xlu0 %v1024_v23, %s1854_s10 }
 0x1b0   : > { %1138 = vrot.lane.b32.xlu1 %v976_v20, %s1856_s26  ;;  %v2319_v20 = vpop.permute.xlu1 %1152 }
 0x1b4   : > { %1187 = vrot.lane.b32.xlu1 %v1025_v19, %s1857_s16 }
 0x1b6   : > { %v1694_v24 = vpop.f32.mrb[2].mxu0 }
 0x1b7   : > { %v822_v25 = vadd.f32 %v1694_v24, %v2198_v15  ;;  %v816_v26 = vpop.f32.mrb[3].mxu0 }
 0x1b8   : > { %1236 = vrot.lane.b32.xlu1 %v1074_v22, %s1858_s7  ;;  %v817_v27 = vadd.f32 %v2198_v15, %v816_v26  ;;  %v2325_v22 = vpop.permute.xlu1 %1201 }
 0x1b9   : > { %v848_v28 = vmax.f32 %v822_v25, 0.0 }
 0x1ba   : > { %v847_v29 = vmax.f32 %v817_v27, 0.0 }
 0x1bb   : > { %856 = vst.msk [vmem:[#allocation2 + $0x41] sm:$0xff] %vm252_vm0, %v848_v28 }
 0x1bc   : > { %895 = vrot.lane.b32.xlu1 %v1024_v23, %s1851_s27  ;;  %855 = vst.msk [vmem:[#allocation2 + $0x31] sm:$0xff] %vm252_vm0, %v847_v29 }
 0x1c0   : > { %944 = vrot.lane.b32.xlu1 %v927_v33, %s1852_s28 }
 0x1c2   : > { %v978_v36 = vld [vmem:[#allocation2 + $0x40] sm:$0xff] }
 0x1c3   : > { %997 = vrot.lane.b32.xlu0 %v978_v36, %s1853_s29  ;;  %v1123_v37 = vld [vmem:[#allocation2 + $0x30] sm:$0xff]  ;;  %873 = vst.msk [vmem:[#allocation3 + $0x20] sm:$0xff] %vm252_vm0, %v978_v36  ;;  %v881_v41 = vld [vmem:[#allocation2 + $0x41] sm:$0xff] }
 0x1c4   : > { %1089 = vrot.lane.b32.xlu1 %v927_v33, %s1855_s15  ;;  %872 = vst.msk [vmem:[#allocation3 + $0x18] sm:$0xff] %vm252_vm0, %v1123_v37  ;;  %v1076_v45 = vld [vmem:[#allocation2 + $0x42] sm:$0xff]  ;;  %v880_v49 = vld [vmem:[#allocation2 + $0x31] sm:$0xff] }
 0x1c5   : > { %v929_v53 = vld [vmem:[#allocation2 + $0x32] sm:$0xff] }
 0x1c7   : > { %901 = vrot.lane.b32.xlu0 %v881_v41, %s1851_s27 }
 0x1c8   : > { %1046 = vrot.lane.b32.xlu1 %v881_v41, %s1854_s10 }
 0x1cb   : > { %1095 = vrot.lane.b32.xlu0 %v1076_v45, %s1855_s15 }
 0x1cc   : > { %950 = vrot.lane.b32.xlu1 %v1076_v45, %s1852_s28 }
 0x1cf   : > { %899 = vrot.lane.b32.xlu0 %v880_v49, %s1851_s27 }
 0x1d0   : > { %1142 = vrot.lane.b32.xlu1 %v978_v36, %s1856_s26 }
 0x1d3   : > { %948 = vrot.lane.b32.xlu0 %v929_v53, %s1852_s28 }
 0x1d4   : > { %1191 = vrot.lane.b32.xlu1 %v881_v41, %s1857_s16 }
 0x1d7   : > { %v1697_v57 = vpop.f32.mrb[4].mxu0  ;;  %1140 = vrot.lane.b32.xlu0 %v1123_v37, %s1856_s26 }
 0x1d8   : > { %v832_v58 = vadd.f32 %v1697_v57, %v2198_v15  ;;  %v826_v59 = vpop.f32.mrb[5].mxu0  ;;  %1240 = vrot.lane.b32.xlu1 %v1076_v45, %s1858_s7 }
 0x1d9   : > { %v827_v62 = vadd.f32 %v2198_v15, %v826_v59 }
 0x1da   : > { %v850_v1 = vmax.f32 %v832_v58, 0.0 }
 0x1db   : > { %v849_v2 = vmax.f32 %v827_v62, 0.0  ;;  %1189 = vrot.lane.b32.xlu0 %v880_v49, %s1857_s16 }
 0x1dc   : > { %858 = vst.msk [vmem:[#allocation2 + $0x61] sm:$0xff] %vm252_vm0, %v850_v1  ;;  %995 = vrot.lane.b32.xlu1 %v1123_v37, %s1853_s29 }
 0x1dd   : > { %857 = vst.msk [vmem:[#allocation2 + $0x51] sm:$0xff] %vm252_vm0, %v849_v2 }
 0x1df   : > { %1093 = vrot.lane.b32.xlu0 %v929_v53, %s1855_s15 }
 0x1e0   : > { %1044 = vrot.lane.b32.xlu1 %v880_v49, %s1854_s10 }
 0x1e3   : > { %v980_v6 = vld [vmem:[#allocation2 + $0x60] sm:$0xff] }
 0x1e4   : > { %1001 = vrot.lane.b32.xlu0 %v980_v6, %s1853_s29  ;;  %1238 = vrot.lane.b32.xlu1 %v929_v53, %s1858_s7  ;;  %v1700_v7 = vpop.f32.mrb[6].mxu0  ;;  %v1125_v8 = vld [vmem:[#allocation2 + $0x50] sm:$0xff]  ;;  %875 = vst.msk [vmem:[#allocation3 + $0x30] sm:$0xff] %vm252_vm0, %v980_v6  ;;  %v883_v13 = vld [vmem:[#allocation2 + $0x61] sm:$0xff] }
 0x1e5   : > { %v842_v10 = vadd.f32 %v1700_v7, %v2198_v15  ;;  %v836_v11 = vpop.f32.mrb[7].mxu0  ;;  %874 = vst.msk [vmem:[#allocation3 + $0x28] sm:$0xff] %vm252_vm0, %v1125_v8  ;;  %v1078_v16 = vld [vmem:[#allocation2 + $0x62] sm:$0xff]  ;;  %v882_v17 = vld [vmem:[#allocation2 + $0x51] sm:$0xff] }
 0x1e6   : > { %v837_v12 = vadd.f32 %v2198_v15, %v836_v11  ;;  %v931_v5 = vld [vmem:[#allocation2 + $0x52] sm:$0xff] }
 0x1e7   : > { %v852_v14 = vmax.f32 %v842_v10, 0.0 }
 0x1e8   : > { %905 = vrot.lane.b32.xlu0 %v883_v13, %s1851_s27  ;;  %1050 = vrot.lane.b32.xlu1 %v883_v13, %s1854_s10  ;;  %v851_v4 = vmax.f32 %v837_v12, 0.0 }
 0x1e9   : > { %860 = vst.msk [vmem:[#allocation2 + $0x81] sm:$0xff] %vm252_vm0, %v852_v14 }
 0x1ea   : > { %859 = vst.msk [vmem:[#allocation2 + $0x71] sm:$0xff] %vm252_vm0, %v851_v4 }
 0x1ec   : > { %1099 = vrot.lane.b32.xlu0 %v1078_v16, %s1855_s15  ;;  %954 = vrot.lane.b32.xlu1 %v1078_v16, %s1852_s28 }
 0x1f0   : > { %903 = vrot.lane.b32.xlu0 %v882_v17, %s1851_s27  ;;  %1146 = vrot.lane.b32.xlu1 %v980_v6, %s1856_s26  ;;  %v982_v0 = vld [vmem:[#allocation2 + $0x80] sm:$0xff] }
 0x1f1   : > { %v981_v15 = vld [vmem:[#allocation2 + $0x70] sm:$0xff]  ;;  %v1031_v18 = vld [vmem:[#allocation2 + $0x81] sm:$0xff] }
 0x1f2   : > { %876 = vst.msk [vmem:[#allocation3 + $0x38] sm:$0xff] %vm252_vm0, %v981_v15  ;;  %v1080_v19 = vld [vmem:[#allocation2 + $0x82] sm:$0xff]  ;;  %v1030_v21 = vld [vmem:[#allocation2 + $0x71] sm:$0xff]  ;;  %vm1162_vm0 = vcmask 458112  }
 0x1f3   : > { %v1079_v23 = vld [vmem:[#allocation2 + $0x72] sm:$0xff] }
 0x1f4   : > { %952 = vrot.lane.b32.xlu0 %v931_v5, %s1852_s28  ;;  %1195 = vrot.lane.b32.xlu1 %v883_v13, %s1857_s16 }
 0x1f8   : > { %1144 = vrot.lane.b32.xlu0 %v1125_v8, %s1856_s26  ;;  %1244 = vrot.lane.b32.xlu1 %v1078_v16, %s1858_s7 }
 0x1fc   : > { %1193 = vrot.lane.b32.xlu0 %v882_v17, %s1857_s16  ;;  %999 = vrot.lane.b32.xlu1 %v1125_v8, %s1853_s29 }
 0x200   : > { %1097 = vrot.lane.b32.xlu0 %v931_v5, %s1855_s15  ;;  %1048 = vrot.lane.b32.xlu1 %v882_v17, %s1854_s10 }
 0x204   : > { %1005 = vrot.lane.b32.xlu0 %v982_v0, %s1853_s29  ;;  %1242 = vrot.lane.b32.xlu1 %v931_v5, %s1858_s7 }
 0x208   : > { %1054 = vrot.lane.b32.xlu0 %v1031_v18, %s1854_s10  ;;  %1103 = vrot.lane.b32.xlu1 %v1080_v19, %s1855_s15 }
 0x20c   : > { %1150 = vrot.lane.b32.xlu0 %v982_v0, %s1856_s26  ;;  %1003 = vrot.lane.b32.xlu1 %v981_v15, %s1853_s29 }
 0x210   : > { %1199 = vrot.lane.b32.xlu0 %v1031_v18, %s1857_s16  ;;  %1052 = vrot.lane.b32.xlu1 %v1030_v21, %s1854_s10 }
 0x214   : > { %907 = vrot.lane.b32.xlu0 %v1030_v21, %s1851_s27  ;;  %1101 = vrot.lane.b32.xlu1 %v1079_v23, %s1855_s15 }
 0x215   : > { %v1043_v24 = vpop.permute.xlu0 %1042 }
 0x216   : > { %v994_v25 = vpop.permute.xlu1 %993 }
 0x218   : > { %956 = vrot.lane.b32.xlu0 %v1079_v23, %s1852_s28  ;;  %1250 = vrot.lane.b32.xlu1 %v2119_v3, %s1858_s7 }
 0x219   : > { %v1092_v26 = vpop.permute.xlu0 %1091 }
 0x21a   : > { %v898_v27 = vpop.permute.xlu1 %897 }
 0x21b   : > { %920 = vst.msk [vmem:[#allocation3 + $0x10] sm:$0xff] %vm917_vm11, %v898_v27 }
 0x21c   : > { %1148 = vrot.lane.b32.xlu0 %v981_v15, %s1856_s26 }
 0x21d   : > { %v992_v29 = vpop.permute.xlu0 %991 }
 0x21e   : > { %v947_v28 = vpop.permute.xlu1 %946  ;;  %1016 = vst.msk [vmem:[#allocation3] sm:$0xff] %vm1015_vm13, %v992_v29 }
 0x21f   : > { %969 = vst.msk [vmem:[#allocation3 + $0x10] sm:$0xff] %vm966_vm12, %v947_v28 }
 0x220   : > { %1197 = vrot.lane.b32.xlu0 %v1030_v21, %s1857_s16 }
 0x221   : > { %v1041_v31 = vpop.permute.xlu0 %1040 }
 0x222   : > { %v1139_v30 = vpop.permute.xlu1 %1138  ;;  %1065 = vst.msk [vmem:[#allocation3] sm:$0xff] %vm1064_vm14, %v1041_v31 }
 0x224   : > { %1246 = vrot.lane.b32.xlu0 %v1079_v23, %s1858_s7 }
 0x226   : > { %v1188_v3 = vpop.permute.xlu1 %1187 }
 0x228   : > { %1248 = vrot.lane.b32.xlu0 %v1080_v19, %s1858_s7 }
 0x22a   : > { %v1237_v32 = vpop.permute.xlu1 %1236 }
 0x22e   : > { %v896_v33 = vpop.permute.xlu1 %895 }
 0x22f   : > { %919 = vst.msk [vmem:[#allocation3 + $0x8] sm:$0xff] %vm917_vm11, %v896_v33  ;;  %v1420_v33 = vld [vmem:[%s2459_s1 + $0x38] sm:$0xff] }
 0x232   : > { %v945_v34 = vpop.permute.xlu1 %944 }
 0x233   : > { %968 = vst.msk [vmem:[#allocation3 + $0x8] sm:$0xff] %vm966_vm12, %v945_v34 }
 0x234   : > { %1017 = vst.msk [vmem:[#allocation3 + $0x8] sm:$0xff] %vm1015_vm13, %v994_v25 }
 0x235   : > { %1066 = vst.msk [vmem:[#allocation3 + $0x8] sm:$0xff] %vm1064_vm14, %v1043_v24  ;;  %v998_v9 = vpop.permute.xlu0 %997 }
 0x236   : > { %v1090_v35 = vpop.permute.xlu1 %1089  ;;  %1115 = vst.msk [vmem:[#allocation3 + $0x8] sm:$0xff] %vm1113_vm15, %v1092_v26 }
 0x237   : > { %1114 = vst.msk [vmem:[#allocation3] sm:$0xff] %vm1113_vm15, %v1090_v35  ;;  %v1417_v35 = vld [vmem:[%s2459_s1 + $0x20] sm:$0xff] }
 0x238   : > { %1163 = vst.msk [vmem:[#allocation3] sm:$0xff] %vm1162_vm0, %v1139_v30  ;;  %v1413_v30 = vld [vmem:[%s2459_s1] sm:$0xff] }
 0x239   : > { %1212 = vst.msk [vmem:[#allocation3] sm:$0xff] %vm1211_vm1, %v1188_v3  ;;  %v902_v36 = vpop.permute.xlu0 %901  ;;  %v1415_v3 = vld [vmem:[%s2459_s1 + $0x10] sm:$0xff] }
 0x23a   : > { %1261 = vst.msk [vmem:[#allocation3] sm:$0xff] %vm1260_vm2, %v1237_v32  ;;  %v1047_v37 = vpop.permute.xlu1 %1046  ;;  %v1418_v32 = vld [vmem:[%s2459_s1 + $0x28] sm:$0xff]  ;;  %v1811_v34 = vpack.c.bf16 %v1415_v3, %v1413_v30 }
 0x23b   : > { %922 = vst.msk [vmem:[#allocation3 + $0x20] sm:$0xff] %vm917_vm11, %v902_v36  ;;  %v1419_v36 = vld [vmem:[%s2459_s1 + $0x30] sm:$0xff] }
 0x23d   : > { %v1096_v38 = vpop.permute.xlu0 %1095 }
 0x23e   : > { %v951_v39 = vpop.permute.xlu1 %950 }
 0x23f   : > { %971 = vst.msk [vmem:[#allocation3 + $0x20] sm:$0xff] %vm966_vm12, %v951_v39  ;;  %v1815_v39 = vpack.c.bf16 %v1419_v36, %v1417_v35 }
 0x241   : > { %v1269_v40 = vld [vmem:[#allocation3] sm:$0xff]  ;;  %v900_v41 = vpop.permute.xlu0 %899 }
 0x242   : > { %1733 = vmatprep.mubr.f32.mxu1 %v1269_v40  ;;  %v1143_v42 = vpop.permute.xlu1 %1142  ;;  %921 = vst.msk [vmem:[#allocation3 + $0x18] sm:$0xff] %vm917_vm11, %v900_v41  ;;  %v1421_v41 = vld [vmem:[%s2459_s1 + $0x40] sm:$0xff] }
 0x245   : > { %v949_v43 = vpop.permute.xlu0 %948 }
 0x246   : > { %v1192_v44 = vpop.permute.xlu1 %1191  ;;  %970 = vst.msk [vmem:[#allocation3 + $0x18] sm:$0xff] %vm966_vm12, %v949_v43  ;;  %v1426_v43 = vld [vmem:[%s2459_s1 + $0x68] sm:$0xff] }
 0x247   : > { %1019 = vst.msk [vmem:[#allocation3 + $0x18] sm:$0xff] %vm1015_vm13, %v998_v9  ;;  %v1813_v9 = vpack.c.bf16 %v1420_v33, %v1418_v32 }
 0x248   : > { %1068 = vst.msk [vmem:[#allocation3 + $0x18] sm:$0xff] %vm1064_vm14, %v1047_v37  ;;  %v1422_v37 = vld [vmem:[%s2459_s1 + $0x48] sm:$0xff] }
 0x249   : > { %1117 = vst.msk [vmem:[#allocation3 + $0x18] sm:$0xff] %vm1113_vm15, %v1096_v38  ;;  %v1141_v45 = vpop.permute.xlu0 %1140  ;;  %v1424_v38 = vld [vmem:[%s2459_s1 + $0x58] sm:$0xff] }
 0x24a   : > { %v1241_v46 = vpop.permute.xlu1 %1240  ;;  %1164 = vst.msk [vmem:[#allocation3 + $0x8] sm:$0xff] %vm1162_vm0, %v1141_v45  ;;  %v1817_v40 = vpack.c.bf16 %v1424_v38, %v1422_v37 }
 0x24d   : > { %v1190_v47 = vpop.permute.xlu0 %1189 }
 0x24e   : > { %v996_v48 = vpop.permute.xlu1 %995  ;;  %1213 = vst.msk [vmem:[#allocation3 + $0x8] sm:$0xff] %vm1211_vm1, %v1190_v47  ;;  %v1425_v47 = vld [vmem:[%s2459_s1 + $0x60] sm:$0xff] }
 0x24f   : > { %1018 = vst.msk [vmem:[#allocation3 + $0x10] sm:$0xff] %vm1015_vm13, %v996_v48  ;;  %v1427_v48 = vld [vmem:[%s2459_s1 + $0x70] sm:$0xff] }
 0x251   : > { %v1094_v49 = vpop.permute.xlu0 %1093 }
 0x252   : > { %v1045_v50 = vpop.permute.xlu1 %1044 }
 0x253   : > { %1067 = vst.msk [vmem:[#allocation3 + $0x10] sm:$0xff] %vm1064_vm14, %v1045_v50  ;;  %v1603_v50 = vld [vmem:[%s2463_s5] ss:$0 sm:$0xff] }
 0x254   : > { %1116 = vst.msk [vmem:[#allocation3 + $0x10] sm:$0xff] %vm1113_vm15, %v1094_v49  ;;  %v1823_v49 = vpack.c.bf16 %v1427_v48, %v1425_v47 }
 0x255   : > { %1165 = vst.msk [vmem:[#allocation3 + $0x10] sm:$0xff] %vm1162_vm0, %v1143_v42  ;;  %v1423_v42 = vld [vmem:[%s2459_s1 + $0x50] sm:$0xff] }
 0x256   : > { %1214 = vst.msk [vmem:[#allocation3 + $0x10] sm:$0xff] %vm1211_vm1, %v1192_v44  ;;  %v1002_v51 = vpop.permute.xlu0 %1001  ;;  %v1239_v52 = vpop.permute.xlu1 %1238  ;;  %v1428_v44 = vld [vmem:[%s2459_s1 + $0x78] sm:$0xff]  ;;  %v1819_v45 = vpack.c.bf16 %v1423_v42, %v1421_v41 }
 0x257   : > { %1263 = vst.msk [vmem:[#allocation3 + $0x10] sm:$0xff] %vm1260_vm2, %v1241_v46  ;;  %1262 = vst.msk [vmem:[#allocation3 + $0x8] sm:$0xff] %vm1260_vm2, %v1239_v52  ;;  %v1821_v46 = vpack.c.bf16 %v1428_v44, %v1426_v43 }
 0x25a   : > { %v906_v53 = vpop.permute.xlu0 %905  ;;  %v1051_v54 = vpop.permute.xlu1 %1050 }
 0x25b   : > { %924 = vst.msk [vmem:[#allocation3 + $0x30] sm:$0xff] %vm917_vm11, %v906_v53 }
 0x25e   : > { %v1100_v55 = vpop.permute.xlu0 %1099  ;;  %v955_v56 = vpop.permute.xlu1 %954  ;;  %v1270_v57 = vld [vmem:[#allocation3 + $0x8] sm:$0xff]  ;;  %v1271_v58 = vld [vmem:[#allocation3 + $0x10] sm:$0xff] }
 0x25f   : > { %973 = vst.msk [vmem:[#allocation3 + $0x30] sm:$0xff] %vm966_vm12, %v955_v56  ;;  %1734 = vmatmul.mubr.f32.vlgmr.msra.gmra.mrb[0].mxu1 %v1270_v57 }
 0x260   : > { %1736 = vmatprep.mubr.f32.mxu1 %v1271_v58 }
 0x262   : > { %v904_v59 = vpop.permute.xlu0 %903  ;;  %v1147_v60 = vpop.permute.xlu1 %1146 }
 0x263   : > { %923 = vst.msk [vmem:[#allocation3 + $0x28] sm:$0xff] %vm917_vm11, %v904_v59 }
 0x266   : > { %v953_v61 = vpop.permute.xlu0 %952  ;;  %v1196_v62 = vpop.permute.xlu1 %1195 }
 0x267   : > { %972 = vst.msk [vmem:[#allocation3 + $0x28] sm:$0xff] %vm966_vm12, %v953_v61 }
 0x268   : > { %1021 = vst.msk [vmem:[#allocation3 + $0x28] sm:$0xff] %vm1015_vm13, %v1002_v51 }
 0x269   : > { %1070 = vst.msk [vmem:[#allocation3 + $0x28] sm:$0xff] %vm1064_vm14, %v1051_v54 }
 0x26a   : > { %1119 = vst.msk [vmem:[#allocation3 + $0x28] sm:$0xff] %vm1113_vm15, %v1100_v55  ;;  %v1145_v63 = vpop.permute.xlu0 %1144  ;;  %v1245_v1 = vpop.permute.xlu1 %1244 }
 0x26b   : > { %1166 = vst.msk [vmem:[#allocation3 + $0x18] sm:$0xff] %vm1162_vm0, %v1145_v63 }
 0x26e   : > { %v1194_v2 = vpop.permute.xlu0 %1193  ;;  %v1000_v6 = vpop.permute.xlu1 %999 }
 0x26f   : > { %1215 = vst.msk [vmem:[#allocation3 + $0x18] sm:$0xff] %vm1211_vm1, %v1194_v2 }
 0x270   : > { %1020 = vst.msk [vmem:[#allocation3 + $0x20] sm:$0xff] %vm1015_vm13, %v1000_v6 }
 0x272   : > { %v1098_v7 = vpop.permute.xlu0 %1097  ;;  %v1049_v8 = vpop.permute.xlu1 %1048 }
 0x273   : > { %1069 = vst.msk [vmem:[#allocation3 + $0x20] sm:$0xff] %vm1064_vm14, %v1049_v8 }
 0x274   : > { %1118 = vst.msk [vmem:[#allocation3 + $0x20] sm:$0xff] %vm1113_vm15, %v1098_v7 }
 0x275   : > { %1167 = vst.msk [vmem:[#allocation3 + $0x20] sm:$0xff] %vm1162_vm0, %v1147_v60 }
 0x276   : > { %1216 = vst.msk [vmem:[#allocation3 + $0x20] sm:$0xff] %vm1211_vm1, %v1196_v62  ;;  %v1006_v10 = vpop.permute.xlu0 %1005  ;;  %v1243_v11 = vpop.permute.xlu1 %1242 }
 0x277   : > { %1265 = vst.msk [vmem:[#allocation3 + $0x20] sm:$0xff] %vm1260_vm2, %v1245_v1  ;;  %1264 = vst.msk [vmem:[#allocation3 + $0x18] sm:$0xff] %vm1260_vm2, %v1243_v11 }
 0x27a   : > { %v1055_v12 = vpop.permute.xlu0 %1054  ;;  %v1104_v13 = vpop.permute.xlu1 %1103 }
 0x27e   : > { %v1151_v14 = vpop.permute.xlu0 %1150  ;;  %v1004_v4 = vpop.permute.xlu1 %1003  ;;  %v1272_v16 = vld [vmem:[#allocation3 + $0x18] sm:$0xff]  ;;  %v1273_v17 = vld [vmem:[#allocation3 + $0x20] sm:$0xff] }
 0x27f   : > { %1022 = vst.msk [vmem:[#allocation3 + $0x30] sm:$0xff] %vm1015_vm13, %v1004_v4  ;;  %1737 = vmatmul.mubr.f32.gmra.mrb[2].mxu1 %v1272_v16 }
 0x280   : > { %1739 = vmatprep.mubr.f32.mxu1 %v1273_v17 }
 0x282   : > { %v1200_v15 = vpop.permute.xlu0 %1199  ;;  %v1053_v5 = vpop.permute.xlu1 %1052 }
 0x283   : > { %1071 = vst.msk [vmem:[#allocation3 + $0x30] sm:$0xff] %vm1064_vm14, %v1053_v5 }
 0x286   : > { %v908_v0 = vpop.permute.xlu0 %907  ;;  %v1102_v18 = vpop.permute.xlu1 %1101 }
 0x287   : > { %925 = vst.msk [vmem:[#allocation3 + $0x38] sm:$0xff] %vm917_vm11, %v908_v0 }
 0x288   : > { %1120 = vst.msk [vmem:[#allocation3 + $0x30] sm:$0xff] %vm1113_vm15, %v1102_v18 }
 0x289   : > { %1169 = vst.msk [vmem:[#allocation3 + $0x30] sm:$0xff] %vm1162_vm0, %v1151_v14 }
 0x28a   : > { %1218 = vst.msk [vmem:[#allocation3 + $0x30] sm:$0xff] %vm1211_vm1, %v1200_v15  ;;  %v957_v19 = vpop.permute.xlu0 %956  ;;  %v1251_v23 = vpop.permute.xlu1 %1250 }
 0x28b   : > { %974 = vst.msk [vmem:[#allocation3 + $0x38] sm:$0xff] %vm966_vm12, %v957_v19 }
 0x28c   : > { %1023 = vst.msk [vmem:[#allocation3 + $0x38] sm:$0xff] %vm1015_vm13, %v1006_v10 }
 0x28d   : > { %1072 = vst.msk [vmem:[#allocation3 + $0x38] sm:$0xff] %vm1064_vm14, %v1055_v12 }
 0x28e   : > { %1121 = vst.msk [vmem:[#allocation3 + $0x38] sm:$0xff] %vm1113_vm15, %v1104_v13  ;;  %v1149_v21 = vpop.permute.xlu0 %1148 }
 0x28f   : > { %1168 = vst.msk [vmem:[#allocation3 + $0x28] sm:$0xff] %vm1162_vm0, %v1149_v21  ;;  %1170 = vst.msk [vmem:[#allocation3 + $0x38] sm:$0xff] %vm1162_vm0, %v2319_v20  ;;  %v1414_v20 = vld [vmem:[%s2459_s1 + $0x8] sm:$0xff] }
 0x290   : > { %1219 = vst.msk [vmem:[#allocation3 + $0x38] sm:$0xff] %vm1211_vm1, %v2325_v22  ;;  %v1416_v22 = vld [vmem:[%s2459_s1 + $0x18] sm:$0xff] }
 0x291   : > { %1268 = vst.msk [vmem:[#allocation3 + $0x38] sm:$0xff] %vm1260_vm2, %v1251_v23  ;;  %v1809_v31 = vpack.c.bf16 %v1416_v22, %v1414_v20 }
 0x292   : > { %v1198_v24 = vpop.permute.xlu0 %1197 }
 0x293   : > { %1217 = vst.msk [vmem:[#allocation3 + $0x28] sm:$0xff] %vm1211_vm1, %v1198_v24  ;;  %1810 = vmatprep.subr.bf16.mxu0 %v1809_v31 }
 0x294   : > { %1812 = vmatpush1.bf16.msra.mxu0 %v1811_v34 }
 0x295   : > { %1814 = vmatprep.subr.bf16.mxu0 %v1813_v9 }
 0x296   : > { %v1247_v25 = vpop.permute.xlu0 %1246 }
 0x297   : > { %1266 = vst.msk [vmem:[#allocation3 + $0x28] sm:$0xff] %vm1260_vm2, %v1247_v25 }
 0x298   : > { %v1276_v28 = vld [vmem:[#allocation3 + $0x38] sm:$0xff]  ;;  %1816 = vmatpush1.bf16.msra.mxu0 %v1815_v39 }
 0x299   : > { %1818 = vmatprep.subr.bf16.mxu0 %v1817_v40 }
 0x29a   : > { %v1249_v26 = vpop.permute.xlu0 %1248 }
 0x29b   : > { %1267 = vst.msk [vmem:[#allocation3 + $0x30] sm:$0xff] %vm1260_vm2, %v1249_v26 }
 0x29c   : > { %1820 = vmatpush1.bf16.msra.mxu0 %v1819_v45 }
 0x29d   : > { %1822 = vmatprep.subr.bf16.mxu0 %v1821_v46 }
 0x29e   : > { %v1274_v27 = vld [vmem:[#allocation3 + $0x28] sm:$0xff] }
 0x29f   : > { %1740 = vmatmul.mubr.f32.gmra.mrb[4].mxu1 %v1274_v27 }
 0x2a0   : > { %1824 = vmatpush1.bf16.msra.mxu0 %v1823_v49 }
 0x2a2   : > { %v1275_v29 = vld [vmem:[#allocation3 + $0x30] sm:$0xff] }
 0x2a3   : > { %1742 = vmatprep.mubr.f32.mxu1 %v1275_v29 }
 0x2a4   : > { %1743 = vmatmul.mubr.f32.gmra.mrb[6].mxu1 %v1276_v28 }
 0x332   : > { %v1735_v51 = vpop.f32.mrb[0].mxu1 }
 0x333   : > { %v1366_v52 = vpop.f32.mrb[1].mxu1  ;;  %v1372_v54 = vadd.f32 %v1735_v51, %v1603_v50 }
 0x334   : > { %v1367_v53 = vadd.f32 %v1603_v50, %v1366_v52 }
 0x335   : > { %v1406_v56 = vmax.f32 %v1372_v54, 0.0 }
 0x336   : > { %v1405_v55 = vmax.f32 %v1367_v53, 0.0 }
 0x338   : > { %1429 = vxpose.xlu0.b32.start [1/8] (short) (narrow) %v1405_v55, 8 }
 0x33c   : > { %1430 = vxpose.xlu0.b32.cont [2/8] (short) (narrow) %v1406_v56, 8 }
 0x352   : > { %v1738_v57 = vpop.f32.mrb[2].mxu1 }
 0x353   : > { %v1376_v58 = vpop.f32.mrb[3].mxu1  ;;  %v1382_v60 = vadd.f32 %v1738_v57, %v1603_v50 }
 0x354   : > { %v1377_v59 = vadd.f32 %v1603_v50, %v1376_v58 }
 0x355   : > { %v1408_v62 = vmax.f32 %v1382_v60, 0.0 }
 0x356   : > { %v1407_v61 = vmax.f32 %v1377_v59, 0.0 }
 0x358   : > { %1431 = vxpose.xlu0.b32.cont [3/8] (short) (narrow) %v1407_v61, 8 }
 0x35c   : > { %1432 = vxpose.xlu0.b32.cont [4/8] (short) (narrow) %v1408_v62, 8 }
 0x372   : > { %v1741_v63 = vpop.f32.mrb[4].mxu1 }
 0x373   : > { %v1386_v1 = vpop.f32.mrb[5].mxu1  ;;  %v1392_v6 = vadd.f32 %v1741_v63, %v1603_v50 }
 0x374   : > { %v1387_v2 = vadd.f32 %v1603_v50, %v1386_v1 }
 0x375   : > { %v1410_v12 = vmax.f32 %v1392_v6, 0.0 }
 0x376   : > { %v1409_v7 = vmax.f32 %v1387_v2, 0.0 }
 0x377   : > { %v1744_v8 = vpop.f32.mrb[6].mxu1 }
 0x378   : > { %1433 = vxpose.xlu0.b32.cont [5/8] (short) (narrow) %v1409_v7, 8  ;;  %v1396_v10 = vpop.f32.mrb[7].mxu1  ;;  %v1402_v14 = vadd.f32 %v1744_v8, %v1603_v50 }
 0x379   : > { %v1397_v11 = vadd.f32 %v1603_v50, %v1396_v10 }
 0x37a   : > { %v1412_v4 = vmax.f32 %v1402_v14, 0.0 }
 0x37b   : > { %v1411_v13 = vmax.f32 %v1397_v11, 0.0 }
 0x37c   : > { %1434 = vxpose.xlu0.b32.cont [6/8] (short) (narrow) %v1410_v12, 8 }
 0x380   : > { %1435 = vxpose.xlu0.b32.cont [7/8] (short) (narrow) %v1411_v13, 8 }
 0x384   : > { %1436 = vxpose.xlu0.b32.end [8/8] (short) (narrow) %v1412_v4, 8 }
 0x3e8   : > { %v1445_v16 = vpop.trf.xlu0 }
 0x3e9   : > { %1604 = vmatmul.mubr.msk.f32.vlgmr.msra.gmra.mrb[8].mxu0 %vm1461_vm3, %v1445_v16 }
 0x4bc   : > { %v1531_v17 = vpop.f32.mrb[8].mxu0 }
 0x4bd   : > { %1536 = vst [vmem:[%s251_s30] sm:$0xff] %v1531_v17  ;;  %v1533_v15 = vpop.f32.mrb[9].mxu0 }
 0x4be   : > { %1537 = vst [vmem:[%s251_s30 + $0x8] sm:$0xff] %v1533_v15 }
 0x4bf PF: > { %s16_s21 = sadd.s32 1, %s1848_s21  }
 0x4c0   : > { %p13_p4 = scmp.ge.s32.totalorder %s16_s21, 4  }
 0x4c2   :  { %15 = sbr.rel (!%p13_p4) target bundleno = 1 (0x1), region = 76 }

</bundles_post_ra>
